<compile_context>
chip_gen: v5e
topology: v5e:2x2
jax: 0.10.0
libtpu: 0.0.40
codegen_flags: <defaults>
</compile_context>

<pallas_src>
import functools
import numpy as np

import jax
import jax.numpy as jnp
from jax.experimental import pallas as pl
from jax.experimental.pallas import tpu as pltpu

# ----------------------------------------------------------------------------
# constants (synthetic stand-ins for shapenet constants; deterministic)
# ----------------------------------------------------------------------------
SHAPENET_MIN_ZMIN = 0.67
SHAPENET_MAX_ZMAX = 0.92
ICO_SPHERE_LEVEL = 1          # cfg.MODEL.MESH_HEAD.ICO_SPHERE_LEVEL
NUM_REFINE_STAGES = 2
HIDDEN_DIM = 128
FEAT_DIMS = (32, 96)          # backbone feature dims; sum = 128 (prefusion feat dims)
PREFUSION_DIMS = sum(FEAT_DIMS)
POSTFUSION_DIMS = 3 * PREFUSION_DIMS   # "stats" fusion -> prefusion * 3


def _round_up(x, m):
    return ((x + m - 1) // m) * m


C_PAD = _round_up(PREFUSION_DIMS, 128)    # 128 — per-view feature channels (lane-aligned)
HID_PAD = _round_up(HIDDEN_DIM, 128)      # 128 — MLP hidden width
OUT_PAD = 128                             # lane-dense slab width for verts / stage output


# ----------------------------------------------------------------------------
# Pallas kernel 1: fused matmul + bias + activation  (backbone conv matmuls)
#   x (tm, K_pad) bf16, w (K_pad, N_pad) bf16, b (1, N_pad) f32 -> f32 out
# ----------------------------------------------------------------------------
def _matmul_bias_act_kernel(x_ref, w_ref, b_ref, o_ref, *, activation):
    y = jnp.dot(x_ref[...], w_ref[...], preferred_element_type=jnp.float32)
    y = y + b_ref[...]
    if activation == "relu":
        y = jnp.maximum(y, 0.0)
    elif activation == "tanh":
        y = jnp.tanh(y)
    o_ref[...] = y.astype(o_ref.dtype)


def pallas_matmul_bias_act(x, w_p, b_p, activation="relu", tm=256):
    """x: (M, K) float; w_p: (K_pad, N_pad) bf16 pre-padded; b_p: (1, N_pad) f32.
    Returns (M, N_pad) float32 (caller slices the valid N columns)."""
    M, K = x.shape
    K_pad, N_pad = w_p.shape
    M_pad = _round_up(M, tm)
    x_p = jnp.pad(x.astype(jnp.bfloat16), ((0, M_pad - M), (0, K_pad - K)))

    out = pl.pallas_call(
        functools.partial(_matmul_bias_act_kernel, activation=activation),
        out_shape=jax.ShapeDtypeStruct((M_pad, N_pad), jnp.float32),
        grid_spec=pltpu.PrefetchScalarGridSpec(
            num_scalar_prefetch=0,
            grid=(M_pad // tm,),
            in_specs=[
                pl.BlockSpec((tm, K_pad), lambda i: (i, 0)),
                pl.BlockSpec((K_pad, N_pad), lambda i: (0, 0)),
                pl.BlockSpec((1, N_pad), lambda i: (0, 0)),
            ],
            out_specs=pl.BlockSpec((tm, N_pad), lambda i: (i, 0)),
        ),
        compiler_params=pltpu.CompilerParams(dimension_semantics=("parallel",)),
    )(x_p, w_p, b_p)
    return out[:M]


# ----------------------------------------------------------------------------
# Pallas kernel 2: fused refinement stage
#   per batch element:  stats(max / mean / std over views)  ->  3-layer MLP  ->
#   vertex update (cur + tanh(offset)), all in one VMEM-resident kernel body.
#   w1 is pre-split into 4 row blocks (max | mean | std | verts) so no lane-concat
#   is needed: h1 = mx@w1a + mean@w1b + std@w1c + verts@w1d + b1.
# ----------------------------------------------------------------------------
def _refine_stage_kernel(f_ref, v_ref, w1_ref, b1_ref, w2_ref, b2_ref,
                         w3_ref, b3_ref, o_ref, *, num_views):
    bf16 = jnp.bfloat16
    f = f_ref[0]                                    # (V, Nv_pad, C_PAD) f32
    inv_v = jnp.float32(1.0 / num_views)
    mx = jnp.max(f, axis=0)                         # (Nv_pad, C_PAD)
    mean = jnp.sum(f, axis=0) * inv_v
    var = jnp.sum(jnp.square(f - mean[None]), axis=0) * inv_v   # unbiased=False (matches ref)
    std = jnp.sqrt(var + 1e-8)
    vp = v_ref[0]                                   # (Nv_pad, 128) f32, cols 3.. are zero

    h = (jnp.dot(mx.astype(bf16), w1_ref[0], preferred_element_type=jnp.float32)
         + jnp.dot(mean.astype(bf16), w1_ref[1], preferred_element_type=jnp.float32)
         + jnp.dot(std.astype(bf16), w1_ref[2], preferred_element_type=jnp.float32)
         + jnp.dot(vp.astype(bf16), w1_ref[3], preferred_element_type=jnp.float32)
         + b1_ref[...])
    h = jnp.maximum(h, 0.0)
    h = jnp.dot(h.astype(bf16), w2_ref[...], preferred_element_type=jnp.float32) + b2_ref[...]
    h = jnp.maximum(h, 0.0)
    y = jnp.dot(h.astype(bf16), w3_ref[...], preferred_element_type=jnp.float32) + b3_ref[...]
    # w3 / b3 are zero beyond column 3 -> tanh(0)=0 there; vp is also zero there,
    # so the padded lanes of the output slab stay exactly 0 (lane-dense unmasked stores).
    o_ref[0] = vp + jnp.tanh(y)


def pallas_refine_stage(mv_feats, verts, stage_w):
    """mv_feats: (B, V, Nv, C) f32; verts: (B, Nv, 3) f32 -> new verts (B, Nv, 3) f32."""
    B, V, Nv, C = mv_feats.shape
    Nv_pad = _round_up(Nv, 8)
    f_p = jnp.pad(mv_feats.astype(jnp.float32),
                  ((0, 0), (0, 0), (0, Nv_pad - Nv), (0, C_PAD - C)))
    v_p = jnp.pad(verts.astype(jnp.float32),
                  ((0, 0), (0, Nv_pad - Nv), (0, OUT_PAD - 3)))
    w1, b1, w2, b2, w3, b3 = stage_w

    out = pl.pallas_call(
        functools.partial(_refine_stage_kernel, num_views=V),
        out_shape=jax.ShapeDtypeStruct((B, Nv_pad, OUT_PAD), jnp.float32),
        grid_spec=pltpu.PrefetchScalarGridSpec(
            num_scalar_prefetch=0,
            grid=(B,),                                         # >=2 parallel steps (v7x megacore)
            in_specs=[
                pl.BlockSpec((1, V, Nv_pad, C_PAD), lambda b: (b, 0, 0, 0)),
                pl.BlockSpec((1, Nv_pad, OUT_PAD), lambda b: (b, 0, 0)),
                pl.BlockSpec((4, C_PAD, HID_PAD), lambda b: (0, 0, 0)),
                pl.BlockSpec((1, HID_PAD), lambda b: (0, 0)),
                pl.BlockSpec((HID_PAD, HID_PAD), lambda b: (0, 0)),
                pl.BlockSpec((1, HID_PAD), lambda b: (0, 0)),
                pl.BlockSpec((HID_PAD, OUT_PAD), lambda b: (0, 0)),
                pl.BlockSpec((1, OUT_PAD), lambda b: (0, 0)),
            ],
            out_specs=pl.BlockSpec((1, Nv_pad, OUT_PAD), lambda b: (b, 0, 0)),
        ),
        compiler_params=pltpu.CompilerParams(dimension_semantics=("parallel",)),
    )(f_p, v_p, w1, b1, w2, b2, w3, b3)
    return out[:, :Nv, :3]


# ----------------------------------------------------------------------------
# backbone: two strided 3x3 convs (im2col glue + Pallas fused matmul)
# ----------------------------------------------------------------------------
def _im2col(x, k=3, stride=2):
    """x: (N, H, W, C), SAME padding -> (N, Ho, Wo, k*k*C), (di,dj,c) ordering."""
    N, H, W, C = x.shape
    pad = k // 2
    xp = jnp.pad(x, ((0, 0), (pad, pad), (pad, pad), (0, 0)))
    Ho = (H + stride - 1) // stride
    Wo = (W + stride - 1) // stride
    cols = []
    for di in range(k):
        for dj in range(k):
            cols.append(xp[:, di:di + stride * Ho:stride,
                           dj:dj + stride * Wo:stride, :])
    return jnp.concatenate(cols, axis=-1)


# TODO(synk): for production-size H,W, move the patch extraction inside a Pallas conv kernel
# (9 shifted jnp.dot accumulations on a VMEM-resident NHWC tile) to avoid the 9x im2col
# materialization; at this 32x32 toy size the bf16 patch tensor is <0.3 MiB so it stays in JAX.
def conv2d_pallas(x, w_p, b_p, cout, stride=2, k=3):
    """x: (N, H, W, Cin) NHWC; w_p: (K_pad, N_pad) bf16; b_p: (1, N_pad) f32."""
    patches = _im2col(x.astype(jnp.bfloat16), k=k, stride=stride)   # bf16: half the HBM traffic
    N, Ho, Wo, Kdim = patches.shape
    M = N * Ho * Wo
    # big M tiles amortize per-step overhead, while keeping >=2 grid steps for megacore.
    tm = min(512, _round_up(max(8, -(-M // 2)), 8))
    y = pallas_matmul_bias_act(patches.reshape(M, Kdim), w_p, b_p, "relu", tm=tm)
    return y[:, :cout].reshape(N, Ho, Wo, cout)


# ----------------------------------------------------------------------------
# ico sphere (pytorch3d.utils.ico_sphere equivalent, deterministic numpy)
# ----------------------------------------------------------------------------
def ico_sphere(level):
    t = (1.0 + np.sqrt(5.0)) / 2.0
    verts = np.array(
        [[-1, t, 0], [1, t, 0], [-1, -t, 0], [1, -t, 0],
         [0, -1, t], [0, 1, t], [0, -1, -t], [0, 1, -t],
         [t, 0, -1], [t, 0, 1], [-t, 0, -1], [-t, 0, 1]], dtype=np.float64)
    verts = verts / np.linalg.norm(verts, axis=1, keepdims=True)
    faces = np.array(
        [[0, 11, 5], [0, 5, 1], [0, 1, 7], [0, 7, 10], [0, 10, 11],
         [1, 5, 9], [5, 11, 4], [11, 10, 2], [10, 7, 6], [7, 1, 8],
         [3, 9, 4], [3, 4, 2], [3, 2, 6], [3, 6, 8], [3, 8, 9],
         [4, 9, 5], [2, 4, 11], [6, 2, 10], [8, 6, 7], [9, 8, 1]], dtype=np.int64)
    for _ in range(level):
        vlist = [v for v in verts]
        edge_map = {}

        def midpoint(a, b):
            key = (min(a, b), max(a, b))
            if key not in edge_map:
                m = (vlist[a] + vlist[b]) / 2.0
                m = m / np.linalg.norm(m)
                edge_map[key] = len(vlist)
                vlist.append(m)
            return edge_map[key]

        new_faces = []
        for a, b, c in faces:
            ab, bc, ca = midpoint(a, b), midpoint(b, c), midpoint(c, a)
            new_faces += [[a, ab, ca], [b, bc, ab], [c, ca, bc], [ab, bc, ca]]
        verts = np.stack(vlist, 0)
        faces = np.array(new_faces, dtype=np.int64)
    return verts.astype(np.float32), faces


# ----------------------------------------------------------------------------
# projection + bilinear vert-align (data-dependent gather, kept in JAX)
# ----------------------------------------------------------------------------
# TODO(synk): bilinear grid_sample gather has no clean Pallas equivalent; done in JAX.
def _bilinear_sample(feat, xy):
    """feat: (H, W, C); xy: (Nv, 2) NDC, align_corners=True, zeros padding for OOB taps."""
    H, W, C = feat.shape
    x = (xy[:, 0] + 1.0) * 0.5 * (W - 1)
    y = (xy[:, 1] + 1.0) * 0.5 * (H - 1)
    x0f, y0f = jnp.floor(x), jnp.floor(y)
    wx, wy = (x - x0f)[:, None], (y - y0f)[:, None]
    x0 = x0f.astype(jnp.int32)
    y0 = y0f.astype(jnp.int32)
    x1, y1 = x0 + 1, y0 + 1

    def tap(yi, xi):
        valid = ((xi >= 0) & (xi < W) & (yi >= 0) & (yi < H))
        f = feat[jnp.clip(yi, 0, H - 1), jnp.clip(xi, 0, W - 1)]
        return f * valid[:, None].astype(feat.dtype)

    return (tap(y0, x0) * (1 - wx) * (1 - wy) + tap(y0, x1) * wx * (1 - wy)
            + tap(y1, x0) * (1 - wx) * wy + tap(y1, x1) * wx * wy)


def vert_align_multiview(feat_maps, verts, P):
    """feat_maps: list of (B, V, Hs, Ws, Cs); verts: (B, Nv, 3); P: (B, V, 4, 4)."""
    B, Nv, _ = verts.shape
    V = P.shape[1]
    verts_h = jnp.concatenate([verts, jnp.ones((B, Nv, 1), verts.dtype)], axis=-1)
    proj = jnp.einsum("bnj,bvij->bvni", verts_h, P)              # (B, V, Nv, 4)
    w = proj[..., 3:4]
    w = jnp.where(jnp.abs(w) < 1e-6, 1e-6, w)
    # keep coords finite for index math; anything outside [-1,1] gets zeros via tap masking
    xy = jnp.clip(proj[..., :2] / w, -10.0, 10.0)
    sampled = []
    for fmap in feat_maps:
        Hs, Ws, Cs = fmap.shape[2:]
        s = jax.vmap(_bilinear_sample)(fmap.reshape(B * V, Hs, Ws, Cs),
                                       xy.reshape(B * V, Nv, 2))
        sampled.append(s.reshape(B, V, Nv, Cs))
    return jnp.concatenate(sampled, axis=-1)                     # (B, V, Nv, sumCs)


# ----------------------------------------------------------------------------
# parameter initialization (deterministic, synthetic) + one-time packing
# ----------------------------------------------------------------------------
def init_params(key):
    ks = jax.random.split(key, 4 + 6 * NUM_REFINE_STAGES)
    p = {}
    p["conv1_w"] = 0.05 * jax.random.normal(ks[0], (3, 3, 3, FEAT_DIMS[0]), jnp.float32)
    p["conv1_b"] = jnp.zeros((FEAT_DIMS[0],), jnp.float32)
    p["conv2_w"] = 0.05 * jax.random.normal(ks[1], (3, 3, FEAT_DIMS[0], FEAT_DIMS[1]), jnp.float32)
    p["conv2_b"] = jnp.zeros((FEAT_DIMS[1],), jnp.float32)
    d_in = POSTFUSION_DIMS + 3
    for s in range(NUM_REFINE_STAGES):
        k0 = 2 + 3 * s
        p[f"s{s}_w1"] = 0.05 * jax.random.normal(ks[k0], (d_in, HIDDEN_DIM), jnp.float32)
        p[f"s{s}_b1"] = jnp.zeros((HIDDEN_DIM,), jnp.float32)
        p[f"s{s}_w2"] = 0.05 * jax.random.normal(ks[k0 + 1], (HIDDEN_DIM, HIDDEN_DIM), jnp.float32)
        p[f"s{s}_b2"] = jnp.zeros((HIDDEN_DIM,), jnp.float32)
        p[f"s{s}_w3"] = 0.05 * jax.random.normal(ks[k0 + 2], (HIDDEN_DIM, 3), jnp.float32)
        p[f"s{s}_b3"] = jnp.zeros((3,), jnp.float32)
    return p


def prepare_params(params):
    """One-time packing: pad weights to MXU-aligned tiles, cast MXU operands to bf16.
    Biases stay f32 (added post-accumulation). Done once, not per forward."""
    assert C_PAD == OUT_PAD, "verts-slab width must match padded w1 row blocks"
    bf16 = jnp.bfloat16

    def pad2(a, rows, cols):
        return jnp.pad(a, ((0, rows - a.shape[0]), (0, cols - a.shape[1])))

    prep = {}
    # backbone convs -> (K_pad, N_pad) bf16 weights, (1, N_pad) f32 biases
    for name, cin in (("conv1", 3), ("conv2", FEAT_DIMS[0])):
        w = params[f"{name}_w"]
        k, cout = w.shape[0], w.shape[-1]
        w2d = w.reshape(k * k * cin, cout)
        prep[f"{name}_w"] = pad2(w2d, _round_up(k * k * cin, 128),
                                 _round_up(cout, 128)).astype(bf16)
        prep[f"{name}_b"] = jnp.pad(params[f"{name}_b"],
                                    ((0, _round_up(cout, 128) - cout),)
                                    ).reshape(1, -1).astype(jnp.float32)

    C = PREFUSION_DIMS
    for s in range(NUM_REFINE_STAGES):
        w1 = params[f"s{s}_w1"]                          # (3C+3, HIDDEN)
        parts = [w1[0 * C:1 * C], w1[1 * C:2 * C], w1[2 * C:3 * C], w1[3 * C:3 * C + 3]]
        parts = [pad2(p, C_PAD, HID_PAD) for p in parts]
        prep[f"s{s}_w1"] = jnp.stack(parts, axis=0).astype(bf16)     # (4, C_PAD, HID_PAD)
        prep[f"s{s}_b1"] = jnp.pad(params[f"s{s}_b1"],
                                   ((0, HID_PAD - HIDDEN_DIM),)).reshape(1, -1).astype(jnp.float32)
        prep[f"s{s}_w2"] = pad2(params[f"s{s}_w2"], HID_PAD, HID_PAD).astype(bf16)
        prep[f"s{s}_b2"] = jnp.pad(params[f"s{s}_b2"],
                                   ((0, HID_PAD - HIDDEN_DIM),)).reshape(1, -1).astype(jnp.float32)
        prep[f"s{s}_w3"] = pad2(params[f"s{s}_w3"], HID_PAD, OUT_PAD).astype(bf16)
        prep[f"s{s}_b3"] = jnp.pad(params[f"s{s}_b3"],
                                   ((0, OUT_PAD - 3),)).reshape(1, -1).astype(jnp.float32)
    return prep


# ----------------------------------------------------------------------------
# SphereInitMultiViewHead forward
# ----------------------------------------------------------------------------
def sphere_init_multiview_forward(prep, imgs, intrinsics, extrinsics):
    """
    imgs:       (B, V, 3, H, W)   (PyTorch NCHW per view)
    intrinsics: (B, V, 4, 4)
    extrinsics: (B, V, 4, 4)
    """
    B, V, Cin, H, W = imgs.shape

    # ---- backbone on flattened views (NCHW -> NHWC) -------------------------
    flat = imgs.reshape(B * V, Cin, H, W).transpose(0, 2, 3, 1)
    f1 = conv2d_pallas(flat, prep["conv1_w"], prep["conv1_b"], FEAT_DIMS[0])   # (BV,H/2,W/2,32)
    f2 = conv2d_pallas(f1, prep["conv2_w"], prep["conv2_b"], FEAT_DIMS[1])     # (BV,H/4,W/4,96)
    feat_maps = [f1.reshape(B, V, *f1.shape[1:]), f2.reshape(B, V, *f2.shape[1:])]

    # ---- process_extrinsics: rel = T_v * T_0^-1 ; P_v = K * rel_v -----------
    ref_inv = jnp.linalg.inv(extrinsics[:, 0])                     # (B, 4, 4)
    rel = jnp.einsum("bvij,bjk->bvik", extrinsics, ref_inv)        # (B, V, 4, 4)
    K = intrinsics[:, 0]                                           # self.K (per-batch 4x4)
    P = jnp.einsum("bij,bvjk->bvik", K, rel)                       # (B, V, 4, 4)

    # ---- sphere init mesh ----------------------------------------------------
    verts_np, faces_np = ico_sphere(ICO_SPHERE_LEVEL)
    offset = jnp.array([0.0, 0.0, -(SHAPENET_MIN_ZMIN + SHAPENET_MAX_ZMAX) / 2.0],
                       jnp.float32)[None]
    init_verts = jnp.asarray(verts_np) * 0.1 + offset              # scale_verts_(0.1) + offset
    Nv = init_verts.shape[0]
    verts0 = jnp.broadcast_to(init_verts[None], (B, Nv, 3))

    # ---- mesh refinement stages: ONE fused Pallas kernel per stage -----------
    # TODO(synk): pytorch3d GraphConv neighbor aggregation over mesh edges not
    # available in the provided source; a per-vertex MLP refinement stage stands in.
    refined = []
    cur = verts0
    for s in range(NUM_REFINE_STAGES):
        mv_feats = vert_align_multiview(feat_maps, cur, P)          # (B, V, Nv, 128)
        stage_w = (prep[f"s{s}_w1"], prep[f"s{s}_b1"], prep[f"s{s}_w2"],
                   prep[f"s{s}_b2"], prep[f"s{s}_w3"], prep[f"s{s}_b3"])
        cur = pallas_refine_stage(mv_feats, cur, stage_w)           # stats + MLP + update fused
        refined.append(cur)

    # reference extract_feature_stats returns uniform 1/V weights
    view_weights = jnp.ones((B, Nv, V, 1), jnp.float32) / V

    return {
        "voxel_scores": None,
        "meshes_pred": refined,                       # list of (B, Nv, 3) verts per stage
        "init_meshes": (verts0, jnp.asarray(faces_np)),
        "view_weights": view_weights,
    }


# ----------------------------------------------------------------------------
if __name__ == "__main__":
    B, V, H, W = 2, 2, 32, 32
    key = jax.random.PRNGKey(0)
    k_img, k_param = jax.random.split(key)

    imgs = jax.random.normal(k_img, (B, V, 3, H, W), jnp.float32)

    # blender-style intrinsic matrix, tiled
    K_blender = np.array([[2.1875, 0, 0, 0],
                          [0, 2.1875, 0, 0],
                          [0, 0, -1.002002, -0.2002002],
                          [0, 0, -1.0, 0]], dtype=np.float32)
    intrinsics = jnp.asarray(np.tile(K_blender, (B, V, 1, 1)))

    # extrinsics: view 0 identity, view 1 small rotation about y
    theta = np.deg2rad(15.0)
    rot_y = np.array([[np.cos(theta), 0, np.sin(theta), 0],
                      [0, 1, 0, 0],
                      [-np.sin(theta), 0, np.cos(theta), 0],
                      [0, 0, 0, 1]], dtype=np.float32)
    ext = np.stack([np.eye(4, dtype=np.float32), rot_y], axis=0)   # (V, 4, 4)
    extrinsics = jnp.asarray(np.tile(ext[None], (B, 1, 1, 1)))

    params = init_params(k_param)
    prep = prepare_params(params)                 # pad/cast weights once (not per forward)

    fwd = jax.jit(sphere_init_multiview_forward)
    out = fwd(prep, imgs, intrinsics, extrinsics)
    jax.block_until_ready(out["meshes_pred"])
    jax.block_until_ready(out["view_weights"])
    print("KERNEL_OK")
</pallas_src>

<mosaic_0001>
module attributes {stable_mosaic.version = 11 : i64} {
  func.func @_matmul_bias_act_kernel(%arg0: i32, %arg1: memref<512x128xbf16, #tpu.memory_space<vmem>>, %arg2: memref<128x128xbf16, #tpu.memory_space<vmem>>, %arg3: memref<1x128xf32, #tpu.memory_space<vmem>>, %arg4: memref<512x128xf32, #tpu.memory_space<vmem>>) attributes {dimension_semantics = [#tpu.dimension_semantics<parallel>], iteration_bounds = array<i64: 2>, scalar_prefetch = 0 : i64, scratch_operands = 0 : i64, tpu.core_type = #tpu.core_type<tc>, window_params = [{transform_indices = @transform_0, window_bounds = array<i64: 512, 128>}, {pipeline_mode = #tpu.pipeline_mode<synchronous>, transform_indices = @transform_1, window_bounds = array<i64: 128, 128>}, {pipeline_mode = #tpu.pipeline_mode<synchronous>, transform_indices = @transform_2, window_bounds = array<i64: 1, 128>}, {transform_indices = @transform_3, window_bounds = array<i64: 512, 128>}]} {
    %c0 = arith.constant 0 : index
    %c0_0 = arith.constant 0 : index
    %0 = vector.load %arg1[%c0, %c0_0] : memref<512x128xbf16, #tpu.memory_space<vmem>>, vector<512x128xbf16>
    %c0_1 = arith.constant 0 : index
    %c0_2 = arith.constant 0 : index
    %1 = vector.load %arg2[%c0_1, %c0_2] : memref<128x128xbf16, #tpu.memory_space<vmem>>, vector<128x128xbf16>
    %cst = arith.constant dense<0.000000e+00> : vector<512x128xf32>
    %2 = tpu.matmul %0, %1, %cst {dimension_numbers = #tpu.dot_dimension_numbers<[1], [0], [0], [1], [0, 0, 1, 1], [], []>} : vector<512x128xbf16>, vector<128x128xbf16>, vector<512x128xf32> -> vector<512x128xf32>
    %c0_3 = arith.constant 0 : index
    %c0_4 = arith.constant 0 : index
    %3 = vector.load %arg3[%c0_3, %c0_4] : memref<1x128xf32, #tpu.memory_space<vmem>>, vector<1x128xf32>
    %4 = vector.broadcast %3 : vector<1x128xf32> to vector<512x128xf32>
    %5 = arith.addf %2, %4 : vector<512x128xf32>
    %cst_5 = arith.constant 0.000000e+00 : f32
    %6 = vector.broadcast %cst_5 : f32 to vector<512x128xf32>
    %7 = arith.maximumf %5, %6 : vector<512x128xf32>
    %c0_6 = arith.constant 0 : index
    %c0_7 = arith.constant 0 : index
    %8 = vector.load %arg4[%c0_6, %c0_7] : memref<512x128xf32, #tpu.memory_space<vmem>>, vector<512x128xf32>
    tpu.vector_store %arg4[%c0_6, %c0_7], %7 {strides = array<i32>} : memref<512x128xf32, #tpu.memory_space<vmem>>, vector<512x128xf32>,
    return
  }
  func.func @transform_0(%arg0: i32) -> (i32, i32) {
    %c0_i32 = arith.constant 0 : i32
    %c0_i32_0 = arith.constant 0 : i32
    return %arg0, %c0_i32 : i32, i32
  }
  func.func @transform_1(%arg0: i32) -> (i32, i32) {
    %c0_i32 = arith.constant 0 : i32
    %c0_i32_0 = arith.constant 0 : i32
    %c0_i32_1 = arith.constant 0 : i32
    return %c0_i32, %c0_i32_0 : i32, i32
  }
  func.func @transform_2(%arg0: i32) -> (i32, i32) {
    %c0_i32 = arith.constant 0 : i32
    %c0_i32_0 = arith.constant 0 : i32
    %c0_i32_1 = arith.constant 0 : i32
    return %c0_i32, %c0_i32_0 : i32, i32
  }
  func.func @transform_3(%arg0: i32) -> (i32, i32) {
    %c0_i32 = arith.constant 0 : i32
    %c0_i32_0 = arith.constant 0 : i32
    return %arg0, %c0_i32 : i32, i32
  }
}

module attributes {stable_mosaic.version = 11 : i64} {
  func.func @_matmul_bias_act_kernel(%arg0: i32, %arg1: memref<128x384xbf16, #tpu.memory_space<vmem>>, %arg2: memref<384x128xbf16, #tpu.memory_space<vmem>>, %arg3: memref<1x128xf32, #tpu.memory_space<vmem>>, %arg4: memref<128x128xf32, #tpu.memory_space<vmem>>) attributes {dimension_semantics = [#tpu.dimension_semantics<parallel>], iteration_bounds = array<i64: 2>, scalar_prefetch = 0 : i64, scratch_operands = 0 : i64, tpu.core_type = #tpu.core_type<tc>, window_params = [{transform_indices = @transform_0, window_bounds = array<i64: 128, 384>}, {pipeline_mode = #tpu.pipeline_mode<synchronous>, transform_indices = @transform_1, window_bounds = array<i64: 384, 128>}, {pipeline_mode = #tpu.pipeline_mode<synchronous>, transform_indices = @transform_2, window_bounds = array<i64: 1, 128>}, {transform_indices = @transform_3, window_bounds = array<i64: 128, 128>}]} {
    %c0 = arith.constant 0 : index
    %c0_0 = arith.constant 0 : index
    %0 = vector.load %arg1[%c0, %c0_0] : memref<128x384xbf16, #tpu.memory_space<vmem>>, vector<128x384xbf16>
    %c0_1 = arith.constant 0 : index
    %c0_2 = arith.constant 0 : index
    %1 = vector.load %arg2[%c0_1, %c0_2] : memref<384x128xbf16, #tpu.memory_space<vmem>>, vector<384x128xbf16>
    %cst = arith.constant dense<0.000000e+00> : vector<128x128xf32>
    %2 = tpu.matmul %0, %1, %cst {dimension_numbers = #tpu.dot_dimension_numbers<[1], [0], [0], [1], [0, 0, 1, 1], [], []>} : vector<128x384xbf16>, vector<384x128xbf16>, vector<128x128xf32> -> vector<128x128xf32>
    %c0_3 = arith.constant 0 : index
    %c0_4 = arith.constant 0 : index
    %3 = vector.load %arg3[%c0_3, %c0_4] : memref<1x128xf32, #tpu.memory_space<vmem>>, vector<1x128xf32>
    %4 = vector.broadcast %3 : vector<1x128xf32> to vector<128x128xf32>
    %5 = arith.addf %2, %4 : vector<128x128xf32>
    %cst_5 = arith.constant 0.000000e+00 : f32
    %6 = vector.broadcast %cst_5 : f32 to vector<128x128xf32>
    %7 = arith.maximumf %5, %6 : vector<128x128xf32>
    %c0_6 = arith.constant 0 : index
    %c0_7 = arith.constant 0 : index
    %8 = vector.load %arg4[%c0_6, %c0_7] : memref<128x128xf32, #tpu.memory_space<vmem>>, vector<128x128xf32>
    tpu.vector_store %arg4[%c0_6, %c0_7], %7 {strides = array<i32>} : memref<128x128xf32, #tpu.memory_space<vmem>>, vector<128x128xf32>,
    return
  }
  func.func @transform_0(%arg0: i32) -> (i32, i32) {
    %c0_i32 = arith.constant 0 : i32
    %c0_i32_0 = arith.constant 0 : i32
    return %arg0, %c0_i32 : i32, i32
  }
  func.func @transform_1(%arg0: i32) -> (i32, i32) {
    %c0_i32 = arith.constant 0 : i32
    %c0_i32_0 = arith.constant 0 : i32
    %c0_i32_1 = arith.constant 0 : i32
    return %c0_i32, %c0_i32_0 : i32, i32
  }
  func.func @transform_2(%arg0: i32) -> (i32, i32) {
    %c0_i32 = arith.constant 0 : i32
    %c0_i32_0 = arith.constant 0 : i32
    %c0_i32_1 = arith.constant 0 : i32
    return %c0_i32, %c0_i32_0 : i32, i32
  }
  func.func @transform_3(%arg0: i32) -> (i32, i32) {
    %c0_i32 = arith.constant 0 : i32
    %c0_i32_0 = arith.constant 0 : i32
    return %arg0, %c0_i32 : i32, i32
  }
}

module attributes {stable_mosaic.version = 11 : i64} {
  func.func @_refine_stage_kernel(%arg0: i32, %arg1: memref<1x2x48x128xf32, #tpu.memory_space<vmem>>, %arg2: memref<1x48x128xf32, #tpu.memory_space<vmem>>, %arg3: memref<4x128x128xbf16, #tpu.memory_space<vmem>>, %arg4: memref<1x128xf32, #tpu.memory_space<vmem>>, %arg5: memref<128x128xbf16, #tpu.memory_space<vmem>>, %arg6: memref<1x128xf32, #tpu.memory_space<vmem>>, %arg7: memref<128x128xbf16, #tpu.memory_space<vmem>>, %arg8: memref<1x128xf32, #tpu.memory_space<vmem>>, %arg9: memref<1x48x128xf32, #tpu.memory_space<vmem>>) attributes {dimension_semantics = [#tpu.dimension_semantics<parallel>], iteration_bounds = array<i64: 2>, scalar_prefetch = 0 : i64, scratch_operands = 0 : i64, tpu.core_type = #tpu.core_type<tc>, window_params = [{transform_indices = @transform_0, window_bounds = array<i64: 1, 2, 48, 128>}, {transform_indices = @transform_1, window_bounds = array<i64: 1, 48, 128>}, {pipeline_mode = #tpu.pipeline_mode<synchronous>, transform_indices = @transform_2, window_bounds = array<i64: 4, 128, 128>}, {pipeline_mode = #tpu.pipeline_mode<synchronous>, transform_indices = @transform_3, window_bounds = array<i64: 1, 128>}, {pipeline_mode = #tpu.pipeline_mode<synchronous>, transform_indices = @transform_4, window_bounds = array<i64: 128, 128>}, {pipeline_mode = #tpu.pipeline_mode<synchronous>, transform_indices = @transform_5, window_bounds = array<i64: 1, 128>}, {pipeline_mode = #tpu.pipeline_mode<synchronous>, transform_indices = @transform_6, window_bounds = array<i64: 128, 128>}, {pipeline_mode = #tpu.pipeline_mode<synchronous>, transform_indices = @transform_7, window_bounds = array<i64: 1, 128>}, {transform_indices = @transform_8, window_bounds = array<i64: 1, 48, 128>}]} {
    %c0 = arith.constant 0 : index
    %c0_0 = arith.constant 0 : index
    %c0_1 = arith.constant 0 : index
    %c0_2 = arith.constant 0 : index
    %0 = vector.load %arg1[%c0, %c0_0, %c0_1, %c0_2] : memref<1x2x48x128xf32, #tpu.memory_space<vmem>>, vector<1x2x48x128xf32>
    %1 = vector.shape_cast %0 : vector<1x2x48x128xf32> to vector<2x48x128xf32>
    %cst = arith.constant dense<0xFF800000> : vector<48x128xf32>
    %2 = vector.multi_reduction <maximumf>, %1, %cst [0] : vector<2x48x128xf32> to vector<48x128xf32>
    %cst_3 = arith.constant dense<0.000000e+00> : vector<48x128xf32>
    %3 = vector.multi_reduction <add>, %1, %cst_3 [0] : vector<2x48x128xf32> to vector<48x128xf32>
    %cst_4 = arith.constant 5.000000e-01 : f32
    %4 = vector.broadcast %cst_4 : f32 to vector<48x128xf32>
    %5 = arith.mulf %3, %4 : vector<48x128xf32>
    %6 = vector.shape_cast %5 : vector<48x128xf32> to vector<1x48x128xf32>
    %7 = vector.broadcast %6 : vector<1x48x128xf32> to vector<2x48x128xf32>
    %8 = arith.subf %1, %7 : vector<2x48x128xf32>
    %9 = arith.mulf %8, %8 : vector<2x48x128xf32>
    %cst_5 = arith.constant dense<0.000000e+00> : vector<48x128xf32>
    %10 = vector.multi_reduction <add>, %9, %cst_5 [0] : vector<2x48x128xf32> to vector<48x128xf32>
    %cst_6 = arith.constant 5.000000e-01 : f32
    %11 = vector.broadcast %cst_6 : f32 to vector<48x128xf32>
    %12 = arith.mulf %10, %11 : vector<48x128xf32>
    %cst_7 = arith.constant 9.99999993E-9 : f32
    %13 = vector.broadcast %cst_7 : f32 to vector<48x128xf32>
    %14 = arith.addf %12, %13 : vector<48x128xf32>
    %15 = math.sqrt %14 : vector<48x128xf32>
    %c0_8 = arith.constant 0 : index
    %c0_9 = arith.constant 0 : index
    %c0_10 = arith.constant 0 : index
    %16 = vector.load %arg2[%c0_8, %c0_9, %c0_10] : memref<1x48x128xf32, #tpu.memory_space<vmem>>, vector<1x48x128xf32>
    %17 = vector.shape_cast %16 : vector<1x48x128xf32> to vector<48x128xf32>
    %18 = arith.truncf %2 : vector<48x128xf32> to vector<48x128xbf16>
    %c0_11 = arith.constant 0 : index
    %c0_12 = arith.constant 0 : index
    %c0_13 = arith.constant 0 : index
    %19 = vector.load %arg3[%c0_11, %c0_12, %c0_13] : memref<4x128x128xbf16, #tpu.memory_space<vmem>>, vector<1x128x128xbf16>
    %20 = vector.shape_cast %19 : vector<1x128x128xbf16> to vector<128x128xbf16>
    %cst_14 = arith.constant dense<0.000000e+00> : vector<48x128xf32>
    %21 = tpu.matmul %18, %20, %cst_14 {dimension_numbers = #tpu.dot_dimension_numbers<[1], [0], [0], [1], [0, 0, 1, 1], [], []>} : vector<48x128xbf16>, vector<128x128xbf16>, vector<48x128xf32> -> vector<48x128xf32>
    %22 = arith.truncf %5 : vector<48x128xf32> to vector<48x128xbf16>
    %c1 = arith.constant 1 : index
    %c0_15 = arith.constant 0 : index
    %c0_16 = arith.constant 0 : index
    %23 = vector.load %arg3[%c1, %c0_15, %c0_16] : memref<4x128x128xbf16, #tpu.memory_space<vmem>>, vector<1x128x128xbf16>
    %24 = vector.shape_cast %23 : vector<1x128x128xbf16> to vector<128x128xbf16>
    %cst_17 = arith.constant dense<0.000000e+00> : vector<48x128xf32>
    %25 = tpu.matmul %22, %24, %cst_17 {dimension_numbers = #tpu.dot_dimension_numbers<[1], [0], [0], [1], [0, 0, 1, 1], [], []>} : vector<48x128xbf16>, vector<128x128xbf16>, vector<48x128xf32> -> vector<48x128xf32>
    %26 = arith.addf %21, %25 : vector<48x128xf32>
    %27 = arith.truncf %15 : vector<48x128xf32> to vector<48x128xbf16>
    %c2 = arith.constant 2 : index
    %c0_18 = arith.constant 0 : index
    %c0_19 = arith.constant 0 : index
    %28 = vector.load %arg3[%c2, %c0_18, %c0_19] : memref<4x128x128xbf16, #tpu.memory_space<vmem>>, vector<1x128x128xbf16>
    %29 = vector.shape_cast %28 : vector<1x128x128xbf16> to vector<128x128xbf16>
    %cst_20 = arith.constant dense<0.000000e+00> : vector<48x128xf32>
    %30 = tpu.matmul %27, %29, %cst_20 {dimension_numbers = #tpu.dot_dimension_numbers<[1], [0], [0], [1], [0, 0, 1, 1], [], []>} : vector<48x128xbf16>, vector<128x128xbf16>, vector<48x128xf32> -> vector<48x128xf32>
    %31 = arith.addf %26, %30 : vector<48x128xf32>
    %32 = arith.truncf %17 : vector<48x128xf32> to vector<48x128xbf16>
    %c3 = arith.constant 3 : index
    %c0_21 = arith.constant 0 : index
    %c0_22 = arith.constant 0 : index
    %33 = vector.load %arg3[%c3, %c0_21, %c0_22] : memref<4x128x128xbf16, #tpu.memory_space<vmem>>, vector<1x128x128xbf16>
    %34 = vector.shape_cast %33 : vector<1x128x128xbf16> to vector<128x128xbf16>
    %cst_23 = arith.constant dense<0.000000e+00> : vector<48x128xf32>
    %35 = tpu.matmul %32, %34, %cst_23 {dimension_numbers = #tpu.dot_dimension_numbers<[1], [0], [0], [1], [0, 0, 1, 1], [], []>} : vector<48x128xbf16>, vector<128x128xbf16>, vector<48x128xf32> -> vector<48x128xf32>
    %36 = arith.addf %31, %35 : vector<48x128xf32>
    %c0_24 = arith.constant 0 : index
    %c0_25 = arith.constant 0 : index
    %37 = vector.load %arg4[%c0_24, %c0_25] : memref<1x128xf32, #tpu.memory_space<vmem>>, vector<1x128xf32>
    %38 = vector.broadcast %37 : vector<1x128xf32> to vector<48x128xf32>
    %39 = arith.addf %36, %38 : vector<48x128xf32>
    %cst_26 = arith.constant 0.000000e+00 : f32
    %40 = vector.broadcast %cst_26 : f32 to vector<48x128xf32>
    %41 = arith.maximumf %39, %40 : vector<48x128xf32>
    %42 = arith.truncf %41 : vector<48x128xf32> to vector<48x128xbf16>
    %c0_27 = arith.constant 0 : index
    %c0_28 = arith.constant 0 : index
    %43 = vector.load %arg5[%c0_27, %c0_28] : memref<128x128xbf16, #tpu.memory_space<vmem>>, vector<128x128xbf16>
    %cst_29 = arith.constant dense<0.000000e+00> : vector<48x128xf32>
    %44 = tpu.matmul %42, %43, %cst_29 {dimension_numbers = #tpu.dot_dimension_numbers<[1], [0], [0], [1], [0, 0, 1, 1], [], []>} : vector<48x128xbf16>, vector<128x128xbf16>, vector<48x128xf32> -> vector<48x128xf32>
    %c0_30 = arith.constant 0 : index
    %c0_31 = arith.constant 0 : index
    %45 = vector.load %arg6[%c0_30, %c0_31] : memref<1x128xf32, #tpu.memory_space<vmem>>, vector<1x128xf32>
    %46 = vector.broadcast %45 : vector<1x128xf32> to vector<48x128xf32>
    %47 = arith.addf %44, %46 : vector<48x128xf32>
    %cst_32 = arith.constant 0.000000e+00 : f32
    %48 = vector.broadcast %cst_32 : f32 to vector<48x128xf32>
    %49 = arith.maximumf %47, %48 : vector<48x128xf32>
    %50 = arith.truncf %49 : vector<48x128xf32> to vector<48x128xbf16>
    %c0_33 = arith.constant 0 : index
    %c0_34 = arith.constant 0 : index
    %51 = vector.load %arg7[%c0_33, %c0_34] : memref<128x128xbf16, #tpu.memory_space<vmem>>, vector<128x128xbf16>
    %cst_35 = arith.constant dense<0.000000e+00> : vector<48x128xf32>
    %52 = tpu.matmul %50, %51, %cst_35 {dimension_numbers = #tpu.dot_dimension_numbers<[1], [0], [0], [1], [0, 0, 1, 1], [], []>} : vector<48x128xbf16>, vector<128x128xbf16>, vector<48x128xf32> -> vector<48x128xf32>
    %c0_36 = arith.constant 0 : index
    %c0_37 = arith.constant 0 : index
    %53 = vector.load %arg8[%c0_36, %c0_37] : memref<1x128xf32, #tpu.memory_space<vmem>>, vector<1x128xf32>
    %54 = vector.broadcast %53 : vector<1x128xf32> to vector<48x128xf32>
    %55 = arith.addf %52, %54 : vector<48x128xf32>
    %56 = math.tanh %55 : vector<48x128xf32>
    %57 = arith.addf %17, %56 : vector<48x128xf32>
    %c0_38 = arith.constant 0 : index
    %c0_39 = arith.constant 0 : index
    %c0_40 = arith.constant 0 : index
    %58 = vector.load %arg9[%c0_38, %c0_39, %c0_40] : memref<1x48x128xf32, #tpu.memory_space<vmem>>, vector<1x48x128xf32>
    %59 = vector.shape_cast %58 : vector<1x48x128xf32> to vector<48x128xf32>
    %60 = vector.shape_cast %57 : vector<48x128xf32> to vector<1x48x128xf32>
    tpu.vector_store %arg9[%c0_38, %c0_39, %c0_40], %60 {strides = array<i32>} : memref<1x48x128xf32, #tpu.memory_space<vmem>>, vector<1x48x128xf32>,
    return
  }
  func.func @transform_0(%arg0: i32) -> (i32, i32, i32, i32) {
    %c0_i32 = arith.constant 0 : i32
    %c0_i32_0 = arith.constant 0 : i32
    %c0_i32_1 = arith.constant 0 : i32
    %c0_i32_2 = arith.constant 0 : i32
    return %arg0, %c0_i32, %c0_i32_0, %c0_i32_1 : i32, i32, i32, i32
  }
  func.func @transform_1(%arg0: i32) -> (i32, i32, i32) {
    %c0_i32 = arith.constant 0 : i32
    %c0_i32_0 = arith.constant 0 : i32
    %c0_i32_1 = arith.constant 0 : i32
    return %arg0, %c0_i32, %c0_i32_0 : i32, i32, i32
  }
  func.func @transform_2(%arg0: i32) -> (i32, i32, i32) {
    %c0_i32 = arith.constant 0 : i32
    %c0_i32_0 = arith.constant 0 : i32
    %c0_i32_1 = arith.constant 0 : i32
    %c0_i32_2 = arith.constant 0 : i32
    return %c0_i32, %c0_i32_0, %c0_i32_1 : i32, i32, i32
  }
  func.func @transform_3(%arg0: i32) -> (i32, i32) {
    %c0_i32 = arith.constant 0 : i32
    %c0_i32_0 = arith.constant 0 : i32
    %c0_i32_1 = arith.constant 0 : i32
    return %c0_i32, %c0_i32_0 : i32, i32
  }
  func.func @transform_4(%arg0: i32) -> (i32, i32) {
    %c0_i32 = arith.constant 0 : i32
    %c0_i32_0 = arith.constant 0 : i32
    %c0_i32_1 = arith.constant 0 : i32
    return %c0_i32, %c0_i32_0 : i32, i32
  }
  func.func @transform_5(%arg0: i32) -> (i32, i32) {
    %c0_i32 = arith.constant 0 : i32
    %c0_i32_0 = arith.constant 0 : i32
    %c0_i32_1 = arith.constant 0 : i32
    return %c0_i32, %c0_i32_0 : i32, i32
  }
  func.func @transform_6(%arg0: i32) -> (i32, i32) {
    %c0_i32 = arith.constant 0 : i32
    %c0_i32_0 = arith.constant 0 : i32
    %c0_i32_1 = arith.constant 0 : i32
    return %c0_i32, %c0_i32_0 : i32, i32
  }
  func.func @transform_7(%arg0: i32) -> (i32, i32) {
    %c0_i32 = arith.constant 0 : i32
    %c0_i32_0 = arith.constant 0 : i32
    %c0_i32_1 = arith.constant 0 : i32
    return %c0_i32, %c0_i32_0 : i32, i32
  }
  func.func @transform_8(%arg0: i32) -> (i32, i32, i32) {
    %c0_i32 = arith.constant 0 : i32
    %c0_i32_0 = arith.constant 0 : i32
    %c0_i32_1 = arith.constant 0 : i32
    return %arg0, %c0_i32, %c0_i32_0 : i32, i32, i32
  }
}

</mosaic_0001>

<bundles_post_ra>
// kernel: sphere_init_multiview_forward.4
= control target key start
LH: loop header
LB: loop body
LE: loop exit
PB: predicated region body
PF: predicated region fallthrough
CT: control target
= control target key end

     0   :  { %s1123_s12 = smov 0   ;;  %s1337_s0 = inlined_call_operand.vmem [shape: bf16[1024,128], index: 0, kind: input, shape index: {}]   ;;  %s1338_s1 = inlined_call_operand.vmem [shape: bf16[128,128], index: 1, kind: input, shape index: {}]   ;;  %s1339_s2 = inlined_call_operand.vmem [shape: f32[1,128], index: 2, kind: input, shape index: {}]   ;;  %s1340_s3 = inlined_call_operand.vmem [shape: f32[1024,128], index: 3, kind: output, shape index: {}]  }
   0x1 LB: > { %s851_s13 = sadd.s32 4294967295, %s1101_s12   ;;  %p855_p0 = scmp.ge.s32.totalorder %s1101_s12, 1  ;;  %s1101_s12 = sphi %s1123_s12, %s13_s12  }
   0x2   : > { %p138_p1 = scmp.lt.s32.totalorder %s1101_s12, 3 }
   0x4   : > { %p139_p2 = pnand %p855_p0, %p138_p1 }
   0x5   : > { %s856_s22 = sshll.u32 (!%p139_p2), %s851_s13, 6 }
   0x6   : > { %142 = sbr.rel (%p139_p2) target bundleno = 302 (0x12e), region = 32  ;;  %p163_p3 = scmp.lt.s32.totalorder (!%p139_p2), %s856_s22, 127 }
   0xb   : > { %v1061_v0 = vld [vmem:[%s1338_s1 + $0x38] sm:$0xff]  ;;  %v1060_v1 = vld [vmem:[%s1338_s1 + $0x30] sm:$0xff]  ;;  %v1059_v2 = vld [vmem:[%s1338_s1 + $0x28] sm:$0xff]  ;;  %s1342_s22 = smov (!%p163_p3, %s856_s22), 127 }
   0xc   : > { %498 = vmatpush.bf16.msra.mxu0 %v1061_v0  ;;  %1062 = vmatpush.bf16.msra.mxu1 %v1061_v0  ;;  %v1058_v3 = vld [vmem:[%s1338_s1 + $0x20] sm:$0xff]  ;;  %v1057_v4 = vld [vmem:[%s1338_s1 + $0x18] sm:$0xff]  ;;  %v1056_v5 = vld [vmem:[%s1338_s1 + $0x10] sm:$0xff]  ;;  %s857_s29 = sshll.u32 %s1342_s22, 2  ;;  %s859_s10 = sshll.u32 %s1342_s22, 3 }
   0xd   : > { %1063 = vmatpush.bf16.msra.mxu2 %v1061_v0  ;;  %1064 = vmatpush.bf16.msra.mxu3 %v1061_v0  ;;  %v1055_v6 = vld [vmem:[%s1338_s1 + $0x8] sm:$0xff]  ;;  %v1054_v7 = vld [vmem:[%s1338_s1] sm:$0xff]  ;;  %s1161_s7 = scalar_lea.vmem %s1337_s0, %s857_s29  ;;  %s1206_s14 = scalar_lea.vmem %s1340_s3, %s859_s10 }
   0xe   : > { %v1022_v8 = vld [vmem:[%s1161_s7] sm:$0xff]  ;;  %v1023_v12 = vld [vmem:[%s1161_s7 + $0x8] sm:$0xff]  ;;  %v1024_v16 = vld [vmem:[%s1161_s7 + $0x10] sm:$0xff] }
   0xf   : > { %v1030_v9 = vld [vmem:[%s1161_s7 + $0x40] sm:$0xff]  ;;  %v1031_v13 = vld [vmem:[%s1161_s7 + $0x48] sm:$0xff]  ;;  %v1032_v17 = vld [vmem:[%s1161_s7 + $0x50] sm:$0xff] }
  0x10   : > { %499 = vmatpush.bf16.msra.mxu0 %v1060_v1  ;;  %1065 = vmatpush.bf16.msra.mxu1 %v1060_v1  ;;  %v1038_v10 = vld [vmem:[%s1161_s7 + $0x80] sm:$0xff]  ;;  %v1039_v14 = vld [vmem:[%s1161_s7 + $0x88] sm:$0xff]  ;;  %v1040_v18 = vld [vmem:[%s1161_s7 + $0x90] sm:$0xff] }
  0x11   : > { %1066 = vmatpush.bf16.msra.mxu2 %v1060_v1  ;;  %1067 = vmatpush.bf16.msra.mxu3 %v1060_v1  ;;  %v1046_v11 = vld [vmem:[%s1161_s7 + $0xc0] sm:$0xff]  ;;  %v1047_v15 = vld [vmem:[%s1161_s7 + $0xc8] sm:$0xff]  ;;  %v1048_v19 = vld [vmem:[%s1161_s7 + $0xd0] sm:$0xff] }
  0x12   : > { %v1025_v20 = vld [vmem:[%s1161_s7 + $0x18] sm:$0xff]  ;;  %v1026_v24 = vld [vmem:[%s1161_s7 + $0x20] sm:$0xff]  ;;  %v1027_v28 = vld [vmem:[%s1161_s7 + $0x28] sm:$0xff] }
  0x13   : > { %v1033_v21 = vld [vmem:[%s1161_s7 + $0x58] sm:$0xff]  ;;  %v1034_v25 = vld [vmem:[%s1161_s7 + $0x60] sm:$0xff]  ;;  %v1035_v29 = vld [vmem:[%s1161_s7 + $0x68] sm:$0xff] }
  0x14   : > { %500 = vmatpush.bf16.msra.mxu0 %v1059_v2  ;;  %1068 = vmatpush.bf16.msra.mxu1 %v1059_v2  ;;  %v1041_v22 = vld [vmem:[%s1161_s7 + $0x98] sm:$0xff]  ;;  %v1042_v26 = vld [vmem:[%s1161_s7 + $0xa0] sm:$0xff]  ;;  %v1043_v30 = vld [vmem:[%s1161_s7 + $0xa8] sm:$0xff] }
  0x15   : > { %1069 = vmatpush.bf16.msra.mxu2 %v1059_v2  ;;  %1070 = vmatpush.bf16.msra.mxu3 %v1059_v2  ;;  %v1049_v23 = vld [vmem:[%s1161_s7 + $0xd8] sm:$0xff]  ;;  %v1050_v27 = vld [vmem:[%s1161_s7 + $0xe0] sm:$0xff]  ;;  %v1051_v31 = vld [vmem:[%s1161_s7 + $0xe8] sm:$0xff] }
  0x16   : > { %v1028_v32 = vld [vmem:[%s1161_s7 + $0x30] sm:$0xff]  ;;  %v1029_v36 = vld [vmem:[%s1161_s7 + $0x38] sm:$0xff]  ;;  %v1198_v40 = vld [vmem:[%s1339_s2] ss:$0 sm:$0xff] }
  0x17   : > { %v1036_v33 = vld [vmem:[%s1161_s7 + $0x70] sm:$0xff]  ;;  %v1037_v37 = vld [vmem:[%s1161_s7 + $0x78] sm:$0xff] }
  0x18   : > { %501 = vmatpush.bf16.msra.mxu0 %v1058_v3  ;;  %1071 = vmatpush.bf16.msra.mxu1 %v1058_v3  ;;  %v1044_v34 = vld [vmem:[%s1161_s7 + $0xb0] sm:$0xff]  ;;  %v1045_v38 = vld [vmem:[%s1161_s7 + $0xb8] sm:$0xff] }
  0x19   : > { %1072 = vmatpush.bf16.msra.mxu2 %v1058_v3  ;;  %1073 = vmatpush.bf16.msra.mxu3 %v1058_v3  ;;  %v1052_v35 = vld [vmem:[%s1161_s7 + $0xf0] sm:$0xff]  ;;  %v1053_v39 = vld [vmem:[%s1161_s7 + $0xf8] sm:$0xff] }
  0x1c   : > { %502 = vmatpush.bf16.msra.mxu0 %v1057_v4  ;;  %1074 = vmatpush.bf16.msra.mxu1 %v1057_v4 }
  0x1d   : > { %1075 = vmatpush.bf16.msra.mxu2 %v1057_v4  ;;  %1076 = vmatpush.bf16.msra.mxu3 %v1057_v4 }
  0x20   : > { %503 = vmatpush.bf16.msra.mxu0 %v1056_v5  ;;  %1077 = vmatpush.bf16.msra.mxu1 %v1056_v5 }
  0x21   : > { %1078 = vmatpush.bf16.msra.mxu2 %v1056_v5  ;;  %1079 = vmatpush.bf16.msra.mxu3 %v1056_v5 }
  0x24   : > { %504 = vmatpush.bf16.msra.mxu0 %v1055_v6  ;;  %1080 = vmatpush.bf16.msra.mxu1 %v1055_v6 }
  0x25   : > { %1081 = vmatpush.bf16.msra.mxu2 %v1055_v6  ;;  %1082 = vmatpush.bf16.msra.mxu3 %v1055_v6 }
  0x28   : > { %505 = vmatpush.bf16.msra.mxu0 %v1054_v7  ;;  %1083 = vmatpush.bf16.msra.mxu1 %v1054_v7 }
  0x29   : > { %1084 = vmatpush.bf16.msra.mxu2 %v1054_v7  ;;  %1085 = vmatpush.bf16.msra.mxu3 %v1054_v7 }
  0x2b   : > { %506 = vmatmul.bf16.vlgmr.msra.gmra.mxu0 %v1022_v8  ;;  %546 = vmatmul.bf16.vlgmr.msra.gmra.mxu1 %v1030_v9 }
  0x2c   : > { %586 = vmatmul.bf16.vlgmr.msra.gmra.mxu2 %v1038_v10  ;;  %626 = vmatmul.bf16.vlgmr.msra.gmra.mxu3 %v1046_v11 }
  0x3b   : > { %511 = vmatmul.bf16.gmra.mxu0 %v1023_v12  ;;  %551 = vmatmul.bf16.gmra.mxu1 %v1031_v13 }
  0x3c   : > { %591 = vmatmul.bf16.gmra.mxu2 %v1039_v14  ;;  %631 = vmatmul.bf16.gmra.mxu3 %v1047_v15 }
  0x4b   : > { %516 = vmatmul.bf16.gmra.mxu0 %v1024_v16  ;;  %556 = vmatmul.bf16.gmra.mxu1 %v1032_v17 }
  0x4c   : > { %596 = vmatmul.bf16.gmra.mxu2 %v1040_v18  ;;  %636 = vmatmul.bf16.gmra.mxu3 %v1048_v19 }
  0x5b   : > { %521 = vmatmul.bf16.gmra.mxu0 %v1025_v20  ;;  %561 = vmatmul.bf16.gmra.mxu1 %v1033_v21 }
  0x5c   : > { %601 = vmatmul.bf16.gmra.mxu2 %v1041_v22  ;;  %641 = vmatmul.bf16.gmra.mxu3 %v1049_v23 }
  0x6b   : > { %526 = vmatmul.bf16.gmra.mxu0 %v1026_v24  ;;  %566 = vmatmul.bf16.gmra.mxu1 %v1034_v25 }
  0x6c   : > { %606 = vmatmul.bf16.gmra.mxu2 %v1042_v26  ;;  %646 = vmatmul.bf16.gmra.mxu3 %v1050_v27 }
  0x7b   : > { %531 = vmatmul.bf16.gmra.mxu0 %v1027_v28  ;;  %571 = vmatmul.bf16.gmra.mxu1 %v1035_v29 }
  0x7c   : > { %611 = vmatmul.bf16.gmra.mxu2 %v1043_v30  ;;  %651 = vmatmul.bf16.gmra.mxu3 %v1051_v31 }
  0x8b   : > { %536 = vmatmul.bf16.gmra.mxu0 %v1028_v32  ;;  %576 = vmatmul.bf16.gmra.mxu1 %v1036_v33 }
  0x8c   : > { %616 = vmatmul.bf16.gmra.mxu2 %v1044_v34  ;;  %656 = vmatmul.bf16.gmra.mxu3 %v1052_v35 }
  0x9b   : > { %541 = vmatmul.bf16.gmra.mxu0 %v1029_v36  ;;  %581 = vmatmul.bf16.gmra.mxu1 %v1037_v37 }
  0x9c   : > { %621 = vmatmul.bf16.gmra.mxu2 %v1045_v38  ;;  %661 = vmatmul.bf16.gmra.mxu3 %v1053_v39 }
  0xa8   : > { %v507_v41 = vpop.f32.mrf.mxu0  ;;  %v547_v42 = vpop.f32.mrf.mxu1 }
  0xa9   : > { %v508_v43 = vadd.f32 %v1198_v40, %v507_v41  ;;  %v548_v44 = vadd.f32 %v1198_v40, %v547_v42 }
  0xab   : > { %v667_v45 = vmax.f32 %v508_v43, 0.0  ;;  %v683_v46 = vmax.f32 %v548_v44, 0.0 }
  0xad   : > { %731 = vst [vmem:[%s1206_s14] sm:$0xff] %v667_v45 }
  0xae   : > { %747 = vst [vmem:[%s1206_s14 + $0x80] sm:$0xff] %v683_v46 }
  0xaf   : > { %v587_v47 = vpop.f32.mrf.mxu2  ;;  %v627_v48 = vpop.f32.mrf.mxu3 }
  0xb0   : > { %v588_v49 = vadd.f32 %v1198_v40, %v587_v47  ;;  %v628_v50 = vadd.f32 %v1198_v40, %v627_v48  ;;  %v509_v51 = vpop.f32.mrf.mxu0  ;;  %v549_v52 = vpop.f32.mrf.mxu1 }
  0xb1   : > { %v510_v53 = vadd.f32 %v1198_v40, %v509_v51  ;;  %v550_v54 = vadd.f32 %v1198_v40, %v549_v52 }
  0xb2   : > { %v699_v55 = vmax.f32 %v588_v49, 0.0  ;;  %v715_v56 = vmax.f32 %v628_v50, 0.0 }
  0xb3   : > { %v668_v57 = vmax.f32 %v510_v53, 0.0  ;;  %v684_v58 = vmax.f32 %v550_v54, 0.0 }
  0xb4   : > { %763 = vst [vmem:[%s1206_s14 + $0x100] sm:$0xff] %v699_v55 }
  0xb5   : > { %779 = vst [vmem:[%s1206_s14 + $0x180] sm:$0xff] %v715_v56 }
  0xb6   : > { %732 = vst [vmem:[%s1206_s14 + $0x8] sm:$0xff] %v668_v57 }
  0xb7   : > { %748 = vst [vmem:[%s1206_s14 + $0x88] sm:$0xff] %v684_v58  ;;  %v589_v59 = vpop.f32.mrf.mxu2  ;;  %v629_v60 = vpop.f32.mrf.mxu3 }
  0xb8   : > { %v590_v61 = vadd.f32 %v1198_v40, %v589_v59  ;;  %v630_v62 = vadd.f32 %v1198_v40, %v629_v60  ;;  %v512_v63 = vpop.f32.mrf.mxu0  ;;  %v552_v0 = vpop.f32.mrf.mxu1 }
  0xb9   : > { %v513_v1 = vadd.f32 %v1198_v40, %v512_v63  ;;  %v553_v2 = vadd.f32 %v1198_v40, %v552_v0 }
  0xba   : > { %v700_v3 = vmax.f32 %v590_v61, 0.0  ;;  %v716_v4 = vmax.f32 %v630_v62, 0.0 }
  0xbb   : > { %v669_v5 = vmax.f32 %v513_v1, 0.0  ;;  %v685_v6 = vmax.f32 %v553_v2, 0.0 }
  0xbc   : > { %764 = vst [vmem:[%s1206_s14 + $0x108] sm:$0xff] %v700_v3 }
  0xbd   : > { %780 = vst [vmem:[%s1206_s14 + $0x188] sm:$0xff] %v716_v4 }
  0xbe   : > { %733 = vst [vmem:[%s1206_s14 + $0x10] sm:$0xff] %v669_v5 }
  0xbf   : > { %749 = vst [vmem:[%s1206_s14 + $0x90] sm:$0xff] %v685_v6  ;;  %v592_v7 = vpop.f32.mrf.mxu2  ;;  %v632_v8 = vpop.f32.mrf.mxu3 }
  0xc0   : > { %v593_v9 = vadd.f32 %v1198_v40, %v592_v7  ;;  %v633_v10 = vadd.f32 %v1198_v40, %v632_v8  ;;  %v514_v11 = vpop.f32.mrf.mxu0  ;;  %v554_v12 = vpop.f32.mrf.mxu1 }
  0xc1   : > { %v515_v13 = vadd.f32 %v1198_v40, %v514_v11  ;;  %v555_v14 = vadd.f32 %v1198_v40, %v554_v12 }
  0xc2   : > { %v701_v15 = vmax.f32 %v593_v9, 0.0  ;;  %v717_v16 = vmax.f32 %v633_v10, 0.0 }
  0xc3   : > { %v670_v17 = vmax.f32 %v515_v13, 0.0  ;;  %v686_v18 = vmax.f32 %v555_v14, 0.0 }
  0xc4   : > { %765 = vst [vmem:[%s1206_s14 + $0x110] sm:$0xff] %v701_v15 }
  0xc5   : > { %781 = vst [vmem:[%s1206_s14 + $0x190] sm:$0xff] %v717_v16 }
  0xc6   : > { %734 = vst [vmem:[%s1206_s14 + $0x18] sm:$0xff] %v670_v17 }
  0xc7   : > { %750 = vst [vmem:[%s1206_s14 + $0x98] sm:$0xff] %v686_v18  ;;  %v594_v19 = vpop.f32.mrf.mxu2  ;;  %v634_v20 = vpop.f32.mrf.mxu3 }
  0xc8   : > { %v595_v21 = vadd.f32 %v1198_v40, %v594_v19  ;;  %v635_v22 = vadd.f32 %v1198_v40, %v634_v20  ;;  %v517_v23 = vpop.f32.mrf.mxu0  ;;  %v557_v24 = vpop.f32.mrf.mxu1 }
  0xc9   : > { %v518_v25 = vadd.f32 %v1198_v40, %v517_v23  ;;  %v558_v26 = vadd.f32 %v1198_v40, %v557_v24 }
  0xca   : > { %v702_v27 = vmax.f32 %v595_v21, 0.0  ;;  %v718_v28 = vmax.f32 %v635_v22, 0.0 }
  0xcb   : > { %v671_v29 = vmax.f32 %v518_v25, 0.0  ;;  %v687_v30 = vmax.f32 %v558_v26, 0.0 }
  0xcc   : > { %766 = vst [vmem:[%s1206_s14 + $0x118] sm:$0xff] %v702_v27 }
  0xcd   : > { %782 = vst [vmem:[%s1206_s14 + $0x198] sm:$0xff] %v718_v28 }
  0xce   : > { %735 = vst [vmem:[%s1206_s14 + $0x20] sm:$0xff] %v671_v29 }
  0xcf   : > { %751 = vst [vmem:[%s1206_s14 + $0xa0] sm:$0xff] %v687_v30  ;;  %v597_v31 = vpop.f32.mrf.mxu2  ;;  %v637_v32 = vpop.f32.mrf.mxu3 }
  0xd0   : > { %v598_v33 = vadd.f32 %v1198_v40, %v597_v31  ;;  %v638_v34 = vadd.f32 %v1198_v40, %v637_v32  ;;  %v519_v35 = vpop.f32.mrf.mxu0  ;;  %v559_v36 = vpop.f32.mrf.mxu1 }
  0xd1   : > { %v520_v37 = vadd.f32 %v1198_v40, %v519_v35  ;;  %v560_v38 = vadd.f32 %v1198_v40, %v559_v36 }
  0xd2   : > { %v703_v39 = vmax.f32 %v598_v33, 0.0  ;;  %v719_v41 = vmax.f32 %v638_v34, 0.0 }
  0xd3   : > { %v672_v42 = vmax.f32 %v520_v37, 0.0  ;;  %v688_v43 = vmax.f32 %v560_v38, 0.0 }
  0xd4   : > { %767 = vst [vmem:[%s1206_s14 + $0x120] sm:$0xff] %v703_v39 }
  0xd5   : > { %783 = vst [vmem:[%s1206_s14 + $0x1a0] sm:$0xff] %v719_v41 }
  0xd6   : > { %736 = vst [vmem:[%s1206_s14 + $0x28] sm:$0xff] %v672_v42 }
  0xd7   : > { %752 = vst [vmem:[%s1206_s14 + $0xa8] sm:$0xff] %v688_v43  ;;  %v599_v44 = vpop.f32.mrf.mxu2  ;;  %v639_v45 = vpop.f32.mrf.mxu3 }
  0xd8   : > { %v600_v46 = vadd.f32 %v1198_v40, %v599_v44  ;;  %v640_v47 = vadd.f32 %v1198_v40, %v639_v45  ;;  %v522_v48 = vpop.f32.mrf.mxu0  ;;  %v562_v49 = vpop.f32.mrf.mxu1 }
  0xd9   : > { %v523_v50 = vadd.f32 %v1198_v40, %v522_v48  ;;  %v563_v51 = vadd.f32 %v1198_v40, %v562_v49 }
  0xda   : > { %v704_v52 = vmax.f32 %v600_v46, 0.0  ;;  %v720_v53 = vmax.f32 %v640_v47, 0.0 }
  0xdb   : > { %v673_v54 = vmax.f32 %v523_v50, 0.0  ;;  %v689_v55 = vmax.f32 %v563_v51, 0.0 }
  0xdc   : > { %768 = vst [vmem:[%s1206_s14 + $0x128] sm:$0xff] %v704_v52 }
  0xdd   : > { %784 = vst [vmem:[%s1206_s14 + $0x1a8] sm:$0xff] %v720_v53 }
  0xde   : > { %737 = vst [vmem:[%s1206_s14 + $0x30] sm:$0xff] %v673_v54 }
  0xdf   : > { %753 = vst [vmem:[%s1206_s14 + $0xb0] sm:$0xff] %v689_v55  ;;  %v602_v56 = vpop.f32.mrf.mxu2  ;;  %v642_v57 = vpop.f32.mrf.mxu3 }
  0xe0   : > { %v603_v58 = vadd.f32 %v1198_v40, %v602_v56  ;;  %v643_v59 = vadd.f32 %v1198_v40, %v642_v57  ;;  %v524_v60 = vpop.f32.mrf.mxu0  ;;  %v564_v61 = vpop.f32.mrf.mxu1 }
  0xe1   : > { %v525_v62 = vadd.f32 %v1198_v40, %v524_v60  ;;  %v565_v63 = vadd.f32 %v1198_v40, %v564_v61 }
  0xe2   : > { %v705_v0 = vmax.f32 %v603_v58, 0.0  ;;  %v721_v1 = vmax.f32 %v643_v59, 0.0 }
  0xe3   : > { %v674_v2 = vmax.f32 %v525_v62, 0.0  ;;  %v690_v3 = vmax.f32 %v565_v63, 0.0 }
  0xe4   : > { %769 = vst [vmem:[%s1206_s14 + $0x130] sm:$0xff] %v705_v0 }
  0xe5   : > { %785 = vst [vmem:[%s1206_s14 + $0x1b0] sm:$0xff] %v721_v1 }
  0xe6   : > { %738 = vst [vmem:[%s1206_s14 + $0x38] sm:$0xff] %v674_v2 }
  0xe7   : > { %754 = vst [vmem:[%s1206_s14 + $0xb8] sm:$0xff] %v690_v3  ;;  %v604_v4 = vpop.f32.mrf.mxu2  ;;  %v644_v5 = vpop.f32.mrf.mxu3 }
  0xe8   : > { %v605_v6 = vadd.f32 %v1198_v40, %v604_v4  ;;  %v645_v7 = vadd.f32 %v1198_v40, %v644_v5  ;;  %v527_v8 = vpop.f32.mrf.mxu0  ;;  %v567_v9 = vpop.f32.mrf.mxu1 }
  0xe9   : > { %v528_v10 = vadd.f32 %v1198_v40, %v527_v8  ;;  %v568_v11 = vadd.f32 %v1198_v40, %v567_v9 }
  0xea   : > { %v706_v12 = vmax.f32 %v605_v6, 0.0  ;;  %v722_v13 = vmax.f32 %v645_v7, 0.0 }
  0xeb   : > { %v675_v14 = vmax.f32 %v528_v10, 0.0  ;;  %v691_v15 = vmax.f32 %v568_v11, 0.0 }
  0xec   : > { %770 = vst [vmem:[%s1206_s14 + $0x138] sm:$0xff] %v706_v12 }
  0xed   : > { %786 = vst [vmem:[%s1206_s14 + $0x1b8] sm:$0xff] %v722_v13 }
  0xee   : > { %739 = vst [vmem:[%s1206_s14 + $0x40] sm:$0xff] %v675_v14 }
  0xef   : > { %755 = vst [vmem:[%s1206_s14 + $0xc0] sm:$0xff] %v691_v15  ;;  %v607_v16 = vpop.f32.mrf.mxu2  ;;  %v647_v17 = vpop.f32.mrf.mxu3 }
  0xf0   : > { %v608_v18 = vadd.f32 %v1198_v40, %v607_v16  ;;  %v648_v19 = vadd.f32 %v1198_v40, %v647_v17  ;;  %v529_v20 = vpop.f32.mrf.mxu0  ;;  %v569_v21 = vpop.f32.mrf.mxu1 }
  0xf1   : > { %v530_v22 = vadd.f32 %v1198_v40, %v529_v20  ;;  %v570_v23 = vadd.f32 %v1198_v40, %v569_v21 }
  0xf2   : > { %v707_v24 = vmax.f32 %v608_v18, 0.0  ;;  %v723_v25 = vmax.f32 %v648_v19, 0.0 }
  0xf3   : > { %v676_v26 = vmax.f32 %v530_v22, 0.0  ;;  %v692_v27 = vmax.f32 %v570_v23, 0.0 }
  0xf4   : > { %771 = vst [vmem:[%s1206_s14 + $0x140] sm:$0xff] %v707_v24 }
  0xf5   : > { %787 = vst [vmem:[%s1206_s14 + $0x1c0] sm:$0xff] %v723_v25 }
  0xf6   : > { %740 = vst [vmem:[%s1206_s14 + $0x48] sm:$0xff] %v676_v26 }
  0xf7   : > { %756 = vst [vmem:[%s1206_s14 + $0xc8] sm:$0xff] %v692_v27  ;;  %v609_v28 = vpop.f32.mrf.mxu2  ;;  %v649_v29 = vpop.f32.mrf.mxu3 }
  0xf8   : > { %v610_v30 = vadd.f32 %v1198_v40, %v609_v28  ;;  %v650_v31 = vadd.f32 %v1198_v40, %v649_v29  ;;  %v532_v32 = vpop.f32.mrf.mxu0  ;;  %v572_v33 = vpop.f32.mrf.mxu1 }
  0xf9   : > { %v533_v34 = vadd.f32 %v1198_v40, %v532_v32  ;;  %v573_v35 = vadd.f32 %v1198_v40, %v572_v33 }
  0xfa   : > { %v708_v36 = vmax.f32 %v610_v30, 0.0  ;;  %v724_v37 = vmax.f32 %v650_v31, 0.0 }
  0xfb   : > { %v677_v38 = vmax.f32 %v533_v34, 0.0  ;;  %v693_v39 = vmax.f32 %v573_v35, 0.0 }
  0xfc   : > { %772 = vst [vmem:[%s1206_s14 + $0x148] sm:$0xff] %v708_v36 }
  0xfd   : > { %788 = vst [vmem:[%s1206_s14 + $0x1c8] sm:$0xff] %v724_v37 }
  0xfe   : > { %741 = vst [vmem:[%s1206_s14 + $0x50] sm:$0xff] %v677_v38 }
  0xff   : > { %757 = vst [vmem:[%s1206_s14 + $0xd0] sm:$0xff] %v693_v39  ;;  %v612_v41 = vpop.f32.mrf.mxu2  ;;  %v652_v42 = vpop.f32.mrf.mxu3 }
 0x100   : > { %v613_v43 = vadd.f32 %v1198_v40, %v612_v41  ;;  %v653_v44 = vadd.f32 %v1198_v40, %v652_v42  ;;  %v534_v45 = vpop.f32.mrf.mxu0  ;;  %v574_v46 = vpop.f32.mrf.mxu1 }
 0x101   : > { %v535_v47 = vadd.f32 %v1198_v40, %v534_v45  ;;  %v575_v48 = vadd.f32 %v1198_v40, %v574_v46 }
 0x102   : > { %v709_v49 = vmax.f32 %v613_v43, 0.0  ;;  %v725_v50 = vmax.f32 %v653_v44, 0.0 }
 0x103   : > { %v678_v51 = vmax.f32 %v535_v47, 0.0  ;;  %v694_v52 = vmax.f32 %v575_v48, 0.0 }
 0x104   : > { %773 = vst [vmem:[%s1206_s14 + $0x150] sm:$0xff] %v709_v49 }
 0x105   : > { %789 = vst [vmem:[%s1206_s14 + $0x1d0] sm:$0xff] %v725_v50 }
 0x106   : > { %742 = vst [vmem:[%s1206_s14 + $0x58] sm:$0xff] %v678_v51 }
 0x107   : > { %758 = vst [vmem:[%s1206_s14 + $0xd8] sm:$0xff] %v694_v52  ;;  %v614_v53 = vpop.f32.mrf.mxu2  ;;  %v654_v54 = vpop.f32.mrf.mxu3 }
 0x108   : > { %v615_v55 = vadd.f32 %v1198_v40, %v614_v53  ;;  %v655_v56 = vadd.f32 %v1198_v40, %v654_v54  ;;  %v537_v57 = vpop.f32.mrf.mxu0  ;;  %v577_v58 = vpop.f32.mrf.mxu1 }
 0x109   : > { %v538_v59 = vadd.f32 %v1198_v40, %v537_v57  ;;  %v578_v60 = vadd.f32 %v1198_v40, %v577_v58 }
 0x10a   : > { %v710_v61 = vmax.f32 %v615_v55, 0.0  ;;  %v726_v62 = vmax.f32 %v655_v56, 0.0 }
 0x10b   : > { %v679_v63 = vmax.f32 %v538_v59, 0.0  ;;  %v695_v0 = vmax.f32 %v578_v60, 0.0 }
 0x10c   : > { %774 = vst [vmem:[%s1206_s14 + $0x158] sm:$0xff] %v710_v61 }
 0x10d   : > { %790 = vst [vmem:[%s1206_s14 + $0x1d8] sm:$0xff] %v726_v62 }
 0x10e   : > { %743 = vst [vmem:[%s1206_s14 + $0x60] sm:$0xff] %v679_v63 }
 0x10f   : > { %759 = vst [vmem:[%s1206_s14 + $0xe0] sm:$0xff] %v695_v0  ;;  %v617_v1 = vpop.f32.mrf.mxu2  ;;  %v657_v2 = vpop.f32.mrf.mxu3 }
 0x110   : > { %v618_v3 = vadd.f32 %v1198_v40, %v617_v1  ;;  %v658_v4 = vadd.f32 %v1198_v40, %v657_v2  ;;  %v539_v5 = vpop.f32.mrf.mxu0  ;;  %v579_v6 = vpop.f32.mrf.mxu1 }
 0x111   : > { %v540_v7 = vadd.f32 %v1198_v40, %v539_v5  ;;  %v580_v8 = vadd.f32 %v1198_v40, %v579_v6 }
 0x112   : > { %v711_v9 = vmax.f32 %v618_v3, 0.0  ;;  %v727_v10 = vmax.f32 %v658_v4, 0.0 }
 0x113   : > { %v680_v11 = vmax.f32 %v540_v7, 0.0  ;;  %v696_v12 = vmax.f32 %v580_v8, 0.0 }
 0x114   : > { %775 = vst [vmem:[%s1206_s14 + $0x160] sm:$0xff] %v711_v9 }
 0x115   : > { %791 = vst [vmem:[%s1206_s14 + $0x1e0] sm:$0xff] %v727_v10 }
 0x116   : > { %744 = vst [vmem:[%s1206_s14 + $0x68] sm:$0xff] %v680_v11 }
 0x117   : > { %760 = vst [vmem:[%s1206_s14 + $0xe8] sm:$0xff] %v696_v12  ;;  %v619_v13 = vpop.f32.mrf.mxu2  ;;  %v659_v14 = vpop.f32.mrf.mxu3 }
 0x118   : > { %v620_v15 = vadd.f32 %v1198_v40, %v619_v13  ;;  %v660_v16 = vadd.f32 %v1198_v40, %v659_v14  ;;  %v542_v17 = vpop.f32.mrf.mxu0  ;;  %v582_v18 = vpop.f32.mrf.mxu1 }
 0x119   : > { %v543_v19 = vadd.f32 %v1198_v40, %v542_v17  ;;  %v583_v20 = vadd.f32 %v1198_v40, %v582_v18 }
 0x11a   : > { %v712_v21 = vmax.f32 %v620_v15, 0.0  ;;  %v728_v22 = vmax.f32 %v660_v16, 0.0 }
 0x11b   : > { %v681_v23 = vmax.f32 %v543_v19, 0.0  ;;  %v697_v24 = vmax.f32 %v583_v20, 0.0 }
 0x11c   : > { %776 = vst [vmem:[%s1206_s14 + $0x168] sm:$0xff] %v712_v21 }
 0x11d   : > { %792 = vst [vmem:[%s1206_s14 + $0x1e8] sm:$0xff] %v728_v22 }
 0x11e   : > { %745 = vst [vmem:[%s1206_s14 + $0x70] sm:$0xff] %v681_v23 }
 0x11f   : > { %761 = vst [vmem:[%s1206_s14 + $0xf0] sm:$0xff] %v697_v24  ;;  %v622_v25 = vpop.f32.mrf.mxu2  ;;  %v662_v26 = vpop.f32.mrf.mxu3 }
 0x120   : > { %v623_v27 = vadd.f32 %v1198_v40, %v622_v25  ;;  %v663_v28 = vadd.f32 %v1198_v40, %v662_v26  ;;  %v544_v29 = vpop.f32.mrf.mxu0  ;;  %v584_v30 = vpop.f32.mrf.mxu1 }
 0x121   : > { %v545_v31 = vadd.f32 %v1198_v40, %v544_v29  ;;  %v585_v32 = vadd.f32 %v1198_v40, %v584_v30 }
 0x122   : > { %v713_v33 = vmax.f32 %v623_v27, 0.0  ;;  %v729_v34 = vmax.f32 %v663_v28, 0.0 }
 0x123   : > { %v682_v35 = vmax.f32 %v545_v31, 0.0  ;;  %v698_v36 = vmax.f32 %v585_v32, 0.0 }
 0x124   : > { %777 = vst [vmem:[%s1206_s14 + $0x170] sm:$0xff] %v713_v33 }
 0x125   : > { %793 = vst [vmem:[%s1206_s14 + $0x1f0] sm:$0xff] %v729_v34 }
 0x126   : > { %746 = vst [vmem:[%s1206_s14 + $0x78] sm:$0xff] %v682_v35 }
 0x127   : > { %762 = vst [vmem:[%s1206_s14 + $0xf8] sm:$0xff] %v698_v36  ;;  %v624_v37 = vpop.f32.mrf.mxu2  ;;  %v664_v38 = vpop.f32.mrf.mxu3 }
 0x128   : > { %v625_v39 = vadd.f32 %v1198_v40, %v624_v37  ;;  %v665_v41 = vadd.f32 %v1198_v40, %v664_v38 }
 0x12a   : > { %v714_v42 = vmax.f32 %v625_v39, 0.0  ;;  %v730_v43 = vmax.f32 %v665_v41, 0.0 }
 0x12c   : > { %778 = vst [vmem:[%s1206_s14 + $0x178] sm:$0xff] %v714_v42 }
 0x12d   : > { %794 = vst [vmem:[%s1206_s14 + $0x1f8] sm:$0xff] %v730_v43 }
 0x12e PF: > { %s13_s12 = sadd.s32 1, %s1101_s12  }
 0x12f   : > { %p10_p4 = scmp.ge.s32.totalorder %s13_s12, 4  }
 0x131   :  { %12 = sbr.rel (!%p10_p4) target bundleno = 1 (0x1), region = 62 }

// kernel: custom-call.11
= control target key start
LH: loop header
LB: loop body
LE: loop exit
PB: predicated region body
PF: predicated region fallthrough
CT: control target
= control target key end

     0   :  { %5 = vsyncpa [#allocation6], 0  ;;  %s911_s0 = inlined_call_operand.vmem [shape: f32[2,4,4], index: 0, kind: input, shape index: {}]   ;;  %s912_s1 = inlined_call_operand.vmem [shape: f32[2,4,4], index: 1, kind: output, shape index: {0}]   ;;  %s913_s2 = inlined_call_operand.hbm [shape: s32[2,4], index: 2, kind: output, shape index: {1}]   ;;  %s914_s3 = inlined_call_operand.vmem [shape: s32[2,4], index: 3, kind: output, shape index: {2}]  }
   0x1   :  { %7 = vsyncpa [#allocation6 + $0x1], 0  ;;  %s735_s12 = smov 0   ;;  %s737_s13 = smov 0  }
   0x2   :  { %s739_s14 = smov 0   ;;  %s741_s15 = smov 0  }
   0x3 LB: > { %s756_s16 = sadd.s32 4294967295, %s708_s15   ;;  %s571_s17 = sadd.s32 4294967294, %s708_s15   ;;  %s708_s15 = sphi %s741_s15, %s920_s15   ;;  %s704_s14 = sphi %s739_s14, %s919_s14   ;;  %s700_s13 = sphi %s737_s13, %s918_s13   ;;  %s696_s12 = sphi %s735_s12, %s917_s12  }
   0x4   : > { %s760_s18 = sadd.s32 1, %s708_s15   ;;  %s17_s19 = sshrl.u32 %s708_s15, 3 }
   0x5   : > { %s18_s20 = sshrl.u32 %s760_s18, 3  ;;  %s22_s21 = sadd.s32 1, %s704_s14 }
   0x6   : > { %s19_s22 = ssub.s32 %s17_s19, %s18_s20  ;;  %p32_p0 = scmp.ne.s32.totalorder %s704_s14, %s700_s13 }
   0x7   : > { %p20_p1 = scmp.eq.s32.totalorder %s19_s22, 0  ;;  %p33_p2 = scmp.eq.s32.totalorder %s756_s16, 1 }
   0x8   : > { %p38_p3 = scmp.ne.s32.totalorder %s700_s13, %s696_s12  ;;  %p39_p4 = scmp.eq.s32.totalorder %s571_s17, 1 }
   0x9   : > { %s771_s23 = scalar_select %p20_p1, %s704_s14, %s22_s21  }
   0xa   : > { %p773_p5 = por %p33_p2, %p32_p0  ;;  %p777_p6 = por %p39_p4, %p38_p3 }
   0xb   : > { %p573_p7 = scmp.ge.s32.totalorder %s708_s15, 2 }
   0xc   : > { %s85_s26 = sand.u32 (!%p573_p7), 1, %s708_s15   ;;  %s575_s27 = sshll.u32 (!%p573_p7), %s708_s15, 2 }
   0xd   : > { %83 = sbr.rel (%p573_p7) target bundleno = 20 (0x14), region = 16  ;;  %s574_s28 = sshll.u32 (!%p573_p7), %s85_s26, 2 }
   0xe   : > { %s89_s4 = scalar_lea.vmem (!%p573_p7), %s911_s0, %s575_s27  ;;  %s87_s5 = scalar_lea.vmem (!%p573_p7), [#allocation1], %s574_s28 }
  0x12   : > { %v106_v0 = vld [vmem:[%s89_s4] sm:$0xf] }
  0x13   : > { %107 = vst [vmem:[%s87_s5] sm:$0xf] %v106_v0 }
  0x14 PF: > { %p576_p8 = scmp.ge.s32.totalorder %s708_s15, 1  ;;  %p124_p9 = scmp.lt.s32.totalorder %s708_s15, 3 }
  0x16   : > { %p125_p10 = pnand %p576_p8, %p124_p9 }
  0x18   : > { %128 = sbr.rel (%p125_p10) target bundleno = 484 (0x1e4), region = 50 }
  0x1d   : > { %s135_s6 = sand.u32 1, %s756_s16   ;;  %s146_s7 = sand.u32 1, %s700_s13   ;;  %v168_v1 = vlaneseq  ;;  %v714_v4 = vmov 0  }
  0x1e   : > { %s793_s8 = sshll.u32 %s135_s6, 2  ;;  %s797_s9 = sshll.u32 %s146_s7, 1 }
  0x1f   : > { %v800_v2 = vshrl.u32 %v168_v1, 7  ;;  %s137_s10 = scalar_lea.vmem [#allocation1], %s793_s8  ;;  %s163_s11 = sand.u32 7, %s756_s16  }
  0x20   : > { %v157_v3 = vld [vmem:[%s137_s10] sm:$0xf]  ;;  %s805_s17 = scalar_lea.vmem [#allocation4], %s163_s11  ;;  %s141_s19 = scalar_lea.vmem [#allocation3], %s793_s8 }
  0x21   : > { %158 = vst [vmem:[#allocation0] sm:$0xf] %v157_v3  ;;  %s148_s20 = scalar_lea.vmem [#allocation5], %s797_s9  ;;  %s154_s21 = scalar_lea.vmem [#allocation8], %s797_s9 }
  0x22   : > { %172 = vst [vmem:[#allocation9] sm:$0xff] %v800_v2  ;;  %s811_s22 = scalar_lea.vmem [#allocation7], %s163_s11  ;;  %s813_s26 = smov 0  }
  0x23   : > { %167 = vst [vmem:[%s805_s17] sm:$0x1] %v714_v4 }
  0x28   : > { %v161_v5 = vld [vmem:[#allocation0] sm:$0xff] }
  0x29   : > { %162 = vst [vmem:[#allocation2] sm:$0xff] %v161_v5 }
  0x2a LB: >> { %vm188_vm0 = vcmp.lt.s32.totalorder %v800_v2, 4  ;;  %v820_v8 = vstv %s712_s26  ;;  %s229_s27 = ssub.s32 128, %s712_s26  ;;  %v235_v39 = vand.u32 127, %v168_v1  ;;  %s241_s28 = scalar_lea.vmem [#allocation2], %s712_s26  ;;  %v238_v42 = vld [vmem:[%s805_s17] ss:$0 sm:$0xff]  ;;  %s712_s26 = sphi %s813_s26, %s178_s26  }
  0x2b   : >> { %vm187_vm1 = vcmp.ge.s32.totalorder %v800_v2, %v820_v8  ;;  %s247_s4 = scalar_lea.vmem [#allocation9], %s712_s26  ;;  %vm267_vm14 = vcmp.gt.s32.totalorder %v800_v2, %v820_v8  ;;  %s178_s26 = sadd.s32 1, %s712_s26  }
  0x2c   : >> { %vm189_vm3 = vmand %vm187_vm1, %vm188_vm0  ;;  %vm236_vm12 = vcmp.eq.s32.totalorder %v235_v39, %v820_v8  ;;  %v249_v44 = vld [vmem:[%s247_s4] ss:$0 sm:$0xff]  ;;  %p175_p11 = scmp.ge.s32.totalorder %s178_s26, 4  }
  0x2d   : > { %s409_s6 = sshrl.u32 (%p175_p11), %s756_s16, 3  ;;  %s415_s26 = sshll.u32 (%p175_p11), %s148_s20, 4  ;;  %s416_s26 = int_to_ptr.vmem [resolvable:$true] %s415_s26 }
  0x2e   : > { %s852_s10 = sshll.u32 (%p175_p11), %s409_s6, 1  ;;  %s363_s6 = scalar_lea.sflag (%p175_p11), [#allocation6], %s146_s7 }
  0x30   : >> { %v183_v6 = vld [vmem:[#allocation2] sm:$0xff]  ;;  %v243_v40 = vld [vmem:[%s241_s28] ss:$0 sm:$0xff] }
  0x31   : >> { %v184_v7 = vand.u32 2147483647, %v183_v6 }
  0x33   : >> { %vm581_vm2 = vcmp.gt.f32.partialorder %v184_v7, -inf }
  0x34   : >> { %vm191_vm4 = vmand %vm189_vm3, %vm581_vm2 }
  0x35   : >> { %v192_v9 = vsel %vm191_vm4, %v800_v2, %v820_v8  ;;  %v193_v10 = vsel %vm191_vm4, %v184_v7, -inf  ;;  %vm284_vm4 = vmand %vm267_vm14, %vm236_vm12 }
  0x36   : >> { %v194_v11 = vrot.slane %v193_v10, 1  ;;  %v195_v12 = vrot.slane %v192_v9, 1 }
  0x38   : >> { %vm196_vm5 = vcmp.ge.f32.partialorder %v194_v11, %v193_v10  ;;  %v199_v13 = vrot.slane %v194_v11, 1  ;;  %v200_v14 = vrot.slane %v195_v12, 1 }
  0x39   : >> { %v197_v15 = vsel %vm196_vm5, %v194_v11, %v193_v10  ;;  %v198_v16 = vsel %vm196_vm5, %v195_v12, %v192_v9  ;;  %vm259_vm5 = vcmp.gt.s32.totalorder %v235_v39, %v820_v8 }
  0x3a   : >> { %vm201_vm6 = vcmp.ge.f32.partialorder %v199_v13, %v197_v15  ;;  %v204_v17 = vrot.slane %v199_v13, 1  ;;  %v205_v18 = vrot.slane %v200_v14, 1 }
  0x3b   : >> { %v202_v19 = vsel %vm201_vm6, %v199_v13, %v197_v15  ;;  %v203_v20 = vsel %vm201_vm6, %v200_v14, %v198_v16 }
  0x3c   : >> { %vm206_vm7 = vcmp.ge.f32.partialorder %v204_v17, %v202_v19  ;;  %v209_v21 = vrot.slane %v204_v17, 1  ;;  %v210_v22 = vrot.slane %v205_v18, 1 }
  0x3d   : >> { %v207_v23 = vsel %vm206_vm7, %v204_v17, %v202_v19  ;;  %v208_v24 = vsel %vm206_vm7, %v205_v18, %v203_v20 }
  0x3e   : >> { %vm211_vm8 = vcmp.ge.f32.partialorder %v209_v21, %v207_v23  ;;  %v214_v25 = vrot.slane %v209_v21, 1  ;;  %v215_v26 = vrot.slane %v210_v22, 1 }
  0x3f   : >> { %v212_v27 = vsel %vm211_vm8, %v209_v21, %v207_v23  ;;  %v213_v28 = vsel %vm211_vm8, %v210_v22, %v208_v24 }
  0x40   : >> { %vm216_vm9 = vcmp.ge.f32.partialorder %v214_v25, %v212_v27  ;;  %v219_v29 = vrot.slane %v214_v25, 1  ;;  %v220_v30 = vrot.slane %v215_v26, 1 }
  0x41   : >> { %v217_v31 = vsel %vm216_vm9, %v214_v25, %v212_v27  ;;  %v218_v32 = vsel %vm216_vm9, %v215_v26, %v213_v28 }
  0x42   : >> { %vm221_vm10 = vcmp.ge.f32.partialorder %v219_v29, %v217_v31  ;;  %v224_v33 = vrot.slane %v219_v29, 1  ;;  %v225_v34 = vrot.slane %v220_v30, 1 }
  0x43   : >> { %v222_v35 = vsel %vm221_vm10, %v219_v29, %v217_v31  ;;  %v223_v36 = vsel %vm221_vm10, %v220_v30, %v218_v32 }
  0x44   : >> { %vm226_vm11 = vcmp.ge.f32.partialorder %v224_v33, %v222_v35 }
  0x45   : >> { %v228_v37 = vsel %vm226_vm11, %v225_v34, %v223_v36 }
  0x46   : >> { %230 = vrot.lane.b32.xlu0 %v228_v37, %s229_s27 }
  0xb8   : >> { %v231_v38 = vpop.permute.xlu0 %230 }
  0xb9   : >> { %590 = vpush %v231_v38 }
  0xea   : >> { %s591_s29 = spop %590 }
  0xeb   : >> { %v237_v41 = vstv %s591_s29  ;;  %s242_s30 = scalar_lea.vmem [#allocation2], %s591_s29  ;;  %s248_s5 = scalar_lea.vmem [#allocation9], %s591_s29 }
  0xec   : >> { %v244_v43 = vld [vmem:[%s242_s30] ss:$0 sm:$0xff]  ;;  %v239_v46 = vsel %vm236_vm12, %v237_v41, %v238_v42 }
  0xed   : >> { %v250_v45 = vld [vmem:[%s248_s5] ss:$0 sm:$0xff]  ;;  %245 = vst [vmem:[%s242_s30] sm:$0x1] %v243_v40  ;;  %vm253_vm13 = vcmp.ne.f32.partialorder %v244_v43, 0.0  ;;  %v260_v62 = vsel %vm259_vm5, %v244_v43, 0.0 }
  0xee   : >> { %246 = vst [vmem:[%s241_s28] sm:$0x1] %v244_v43  ;;  %vm254_vm15 = vmand %vm236_vm12, %vm253_vm13  ;;  %s413_s28 = scalar_lea.hbm (%p175_p11), %s913_s2, %s852_s10 }
  0xef   : >> { %251 = vst [vmem:[%s248_s5] sm:$0x1] %v249_v44  ;;  %v255_v47 = vsel %vm254_vm15, %v244_v43, 1.0  ;;  %s417_s29 = sshll.u32 (%p175_p11), %s413_s28, 4  ;;  %s418_s29 = int_to_ptr.hbm [resolvable:$true] %s417_s29 }
  0xf0   : >> { %252 = vst [vmem:[%s247_s4] sm:$0x1] %v250_v45  ;;  %v268_v48 = vsel %vm267_vm14, %v255_v47, 1.0  ;;  %s656_s11 = sshra.s32 (%p175_p11), %s418_s29, 4  ;;  %s657_s11 = int_to_ptr.hbm [resolvable:$true] %s656_s11 }
  0xf1   : >> { %640 = vrcp.f32 %v268_v48  ;;  %240 = vst [vmem:[%s805_s17] sm:$0x1] %v239_v46  ;;  %v280_v52 = vand.u32 2147483648, %v268_v48  ;;  %v278_v54 = vand.u32 2147483647, %v268_v48  ;;  %vm274_vm1 = vweird.f32 %v268_v48  ;;  %s585_s17 = sshll.u32 (%p175_p11), %s756_s16, 2  ;;  %s658_s16 = scalar_lea.hbm (%p175_p11), %s657_s11, 2 }
  0xf2   : > { %s372_s5 = scalar_lea.vmem (%p175_p11), %s912_s1, %s585_s17  ;;  %p659_p12 = scmp.ne.s32.totalorder (%p175_p11), %s657_s11, %s658_s16 }
  0xf3   : >> { %v281_v56 = vor.u32 1.1754944e-38, %v280_v52  ;;  %vm279_vm3 = vcmp.eq.f32.partialorder %v278_v54, 8.507059e+37  ;;  %s662_s17 = scalar_lea.hbm (%p175_p11), %s913_s2, 2  ;;  %p663_p1 = scmp.lt.s32.totalorder (%p175_p11), %s657_s11, %s913_s2 }
  0xf4   : > { %p660_p13 = pnand (%p175_p11), %p659_p12, %p773_p5  ;;  %p664_p2 = scmp.lt.s32.totalorder (%p175_p11), %s662_s17, %s658_s16 }
  0xf5   : >> { %v264_v58 = vld [vmem:[#allocation2] sm:$0xff] }
  0xf6   : > { %p661_p0 = pneg (%p175_p11), %p660_p13  ;;  %p665_p3 = por (%p175_p11), %p664_p2, %p663_p1 }
  0xf7   : >> { %v641_v49 = vpop.eup %640  ;;  %v291_v4 = vld [vmem:[#allocation9] sm:$0xff] (%p175_p11) }
  0xf8   : >> { %v270_v50 = vmul.f32 %v641_v49, %v268_v48  ;;  %vm275_vm0 = vweird.f32 %v641_v49  ;;  %v348_v1 = vld [vmem:[#allocation4] sm:$0x3] (%p175_p11)  ;;  %p666_p4 = pnand (%p175_p11), %p665_p3, %p661_p0 }
  0xf9   : >> { %vm276_vm2 = vmor %vm274_vm1, %vm275_vm0  ;;  %351 = vst [vmem:[%s148_s20] sm:$0x3] (%p175_p11), %v348_v1 }
  0xfa   : >> { %v271_v51 = vsub.f32 1.0, %v270_v50 }
  0xfc   : >> { %v272_v53 = vmul.f32 %v641_v49, %v271_v51 }
  0xfe   : >> { %v273_v55 = vadd.f32 %v641_v49, %v272_v53 }
 0x100   : >> { %v277_v57 = vsel %vm276_vm2, %v641_v49, %v273_v55 }
 0x101   : >> { %v282_v59 = vsel %vm279_vm3, %v281_v56, %v277_v57 }
 0x102   : >> { %v283_v60 = vmul.f32 %v282_v59, %v264_v58 }
 0x104   : >> { %v285_v61 = vsel %vm284_vm4, %v283_v60, 0.0 }
 0x105   : >> { %286 = vadd.xlane.f32.xlu0 %v285_v61 }
 0x12e   : > { %307 = vxpose.xlu0.b32.start.end [1/1] (short) (narrow) (%p175_p11), %v291_v4, 8 }
 0x178   : >> { %v287_v63 = vpop.xlane.xlu0 %286 }
 0x179   : >> { %v288_v0 = vmul.f32 %v287_v63, %v260_v62  ;;  %177 = sbr.rel (!%p175_p11) target bundleno = 42 (0x2a), region = 202 }
 0x17b   : >> { %v289_v3 = vsub.f32 %v283_v60, %v288_v0 }
 0x17d   : >> { %290 = vst [vmem:[#allocation2] sm:$0xff] %v289_v3 }
 0x184   : > { %v342_v5 = vld [vmem:[#allocation2] sm:$0xf] }
 0x185   : > { %345 = vst [vmem:[%s141_s19] sm:$0xf] %v342_v5 }
 0x18c   : > { %v389_v2 = vld [vmem:[%s141_s19] sm:$0xf] }
 0x18d   : > { %390 = vst [vmem:[%s372_s5] sm:$0xf] %v389_v2 }
 0x18e   : > { %669 = shalt.err (!%p666_p4)
}
 0x18f   : > { %592 = dma.vmem_to_hbm [thread:$0]  (%p773_p5), %s416_s26, 32, %s418_s29, %s363_s6  }
 0x190   : > { %s426_s19 = scalar_lea.vmem (%p773_p5), %s914_s3, %s852_s10 }
 0x1d2   : > { %v323_v6 = vpop.trf.xlu0 }
 0x1d3   : > { %339 = vst [vmem:[%s811_s22] sm:$0x1] %v323_v6 }
 0x1d7   : > { %423 = sbr.rel (!%p773_p5) target bundleno = 484 (0x1e4), region = 96 }
 0x1da   : > { %v354_v7 = vld [vmem:[#allocation7] sm:$0x3] }
 0x1db   : > { %357 = vst [vmem:[%s154_s21] sm:$0x3] %v354_v7 }
 0x1e2   : > { %v443_v8 = vld [vmem:[%s154_s21] sm:$0x3] }
 0x1e3   : > { %444 = vst [vmem:[%s426_s19] sm:$0x3] %v443_v8 }
 0x1e4 PF: > { %s472_s20 = sand.u32 1, %s696_s12   ;;  %p595_p8 = pnand %p573_p7, %p777_p6 }
 0x1e5   : > { %s473_s24 = scalar_lea.sflag [#allocation6], %s472_s20 }
 0x1e6   : > { %p596_p9 = pneg %p595_p8 }
 0x1e8   : > { %691 = dma.done.wait (%p596_p9), %s473_s24, 32  }
 0x1e9   : > { %693 = vsyncadd (%p596_p9), %s473_s24, 4294967264  ;;  %p10_p5 = scmp.ge.s32.totalorder %s760_s18, 4   ;;  %s917_s12 = smov %s700_s13 }
 0x1ea   : > { %s918_s13 = smov %s704_s14  ;;  %s919_s14 = smov %s771_s23 }
 0x1eb   : > { %s920_s15 = smov %s760_s18  ;;  %12 = sbr.rel (!%p10_p5) target bundleno = 3 (0x3), region = 213 }
 0x1f0   :  { %486 = vsyncpa [#allocation6], 1 }
 0x1f1   :  { %488 = vsyncpa [#allocation6 + $0x1], 1 }

// kernel: custom-call.13
= control target key start
LH: loop header
LB: loop body
LE: loop exit
PB: predicated region body
PF: predicated region fallthrough
CT: control target
= control target key end

     0   :  { %s383_s6 = smov 0   ;;  %s385_s7 = smov 0   ;;  %s432_s0 = inlined_call_operand.vmem [shape: f32[2,1,4,4], index: 0, kind: input, shape index: {}]   ;;  %s433_s1 = inlined_call_operand.vmem [shape: f32[2,1,4,4], index: 1, kind: output, shape index: {}]  }
   0x1   :  { %s387_s8 = smov 0  }
   0x2 LB: > { %s309_s9 = sadd.s32 4294967295, %s370_s8   ;;  %s33_s10 = sadd.s32 1, %s366_s7  ;;  %s370_s8 = sphi %s387_s8, %s7_s8   ;;  %s366_s7 = sphi %s385_s7, %s435_s7   ;;  %s362_s6 = sphi %s383_s6, %s434_s6  }
   0x3   : > { %p35_p0 = scmp.ge.s32.totalorder %s33_s10, 2  ;;  %p311_p1 = scmp.ge.s32.totalorder %s370_s8, 2 }
   0x4   : > { %s49_s11 = sand.u32 (!%p311_p1), 1, %s370_s8   ;;  %s313_s12 = sshll.u32 (!%p311_p1), %s366_s7, 2 }
   0x5   : > { %s437_s10 = smov (%p35_p0, %s33_s10), 0  ;;  %47 = sbr.rel (%p311_p1) target bundleno = 12 (0xc), region = 16 }
   0x6   : > { %s312_s13 = sshll.u32 (!%p311_p1), %s49_s11, 2  ;;  %s56_s16 = scalar_lea.vmem (!%p311_p1), %s432_s0, %s313_s12 }
   0x7   : > { %s51_s17 = scalar_lea.vmem (!%p311_p1), [#allocation1], %s312_s13 }
   0xa   : > { %v73_v0 = vld [vmem:[%s56_s16] sm:$0xf] }
   0xb   : > { %74 = vst [vmem:[%s51_s17] sm:$0xf] %v73_v0 }
   0xc PF: > { %p314_p2 = scmp.ge.s32.totalorder %s370_s8, 1  ;;  %p91_p3 = scmp.lt.s32.totalorder %s370_s8, 3 }
   0xe   : > { %p92_p4 = pnand %p314_p2, %p91_p3 }
  0x10   : > { %95 = sbr.rel (%p92_p4) target bundleno = 556 (0x22c), region = 50 }
  0x15   : > { %s410_s18 = sand.u32 1, %s309_s9   ;;  %v113_v1 = vlaneseq  ;;  %v372_v20 = vmov -1.0   ;;  %s318_s22 = sshll.u32 %s362_s6, 2 }
  0x16   : > { %s315_s19 = sshll.u32 %s410_s18, 2  ;;  %s216_s25 = scalar_lea.vmem %s433_s1, %s318_s22 }
  0x17   : > { %s104_s20 = scalar_lea.vmem [#allocation1], %s315_s19  ;;  %v114_v3 = vand.u32 127, %v113_v1  ;;  %v117_v4 = vshrl.u32 %v113_v1, 7  ;;  %s108_s21 = scalar_lea.vmem [#allocation3], %s315_s19 }
  0x18   : > { %v111_v2 = vld [vmem:[%s104_s20] sm:$0xf] }
  0x19   : > { %112 = vst [vmem:[#allocation0] sm:$0xf] %v111_v2  ;;  %vm119_vm0 = vcmp.eq.s32.totalorder %v117_v4, %v114_v3  ;;  %vm115_vm1 = vcmp.lt.s32.totalorder %v114_v3, 4  ;;  %vm124_vm2 = vcmp.ge.s32.totalorder %v117_v4, %v114_v3  ;;  %vm151_vm8 = vcmp.eq.s32.totalorder %v114_v3, 0 }
  0x1a   : > { %vm125_vm3 = vmand %vm124_vm2, %vm115_vm1  ;;  %vm148_vm9 = vcmp.eq.s32.totalorder %v114_v3, %v117_v4  ;;  %v152_v21 = vsel %vm151_vm8, 1.0, %v372_v20  ;;  %vm159_vm10 = vcmp.eq.s32.totalorder %v114_v3, 1  ;;  %vm169_vm11 = vcmp.eq.s32.totalorder %v114_v3, 2 }
  0x1b   : > { %v153_v22 = vsel %vm148_vm9, %v152_v21, 0.0  ;;  %vm179_vm12 = vcmp.eq.s32.totalorder %v114_v3, 3 }
  0x20   : > { %v120_v5 = vld [vmem:[#allocation0] sm:$0xff] }
  0x21   : > { %v121_v6 = vsel %vm119_vm0, %v120_v5, 0.0  ;;  %v126_v15 = vsel %vm125_vm3, %v120_v5, 0.0 }
  0x22   : > { %122 = vadd.xlane.f32.xlu0 %v121_v6 }
  0x95   : > { %v123_v7 = vpop.xlane.xlu0 %122 }
  0x96   : > { %346 = vrcp.f32 %v123_v7  ;;  %v138_v11 = vand.u32 2147483648, %v123_v7  ;;  %v136_v13 = vand.u32 2147483647, %v123_v7  ;;  %vm132_vm5 = vweird.f32 %v123_v7 }
  0x98   : > { %v139_v16 = vor.u32 1.1754944e-38, %v138_v11  ;;  %vm137_vm7 = vcmp.eq.f32.partialorder %v136_v13, 8.507059e+37 }
  0x9c   : > { %v347_v8 = vpop.eup %346 }
  0x9d   : > { %v128_v9 = vmul.f32 %v347_v8, %v123_v7  ;;  %vm133_vm4 = vweird.f32 %v347_v8 }
  0x9e   : > { %vm134_vm6 = vmor %vm132_vm5, %vm133_vm4 }
  0x9f   : > { %v129_v10 = vsub.f32 1.0, %v128_v9 }
  0xa1   : > { %v130_v12 = vmul.f32 %v347_v8, %v129_v10 }
  0xa3   : > { %v131_v14 = vadd.f32 %v347_v8, %v130_v12 }
  0xa5   : > { %v135_v17 = vsel %vm134_vm6, %v347_v8, %v131_v14 }
  0xa6   : > { %v140_v18 = vsel %vm137_vm7, %v139_v16, %v135_v17 }
  0xa7   : > { %v141_v19 = vmul.f32 %v140_v18, %v126_v15 }
  0xa9   : > { %142 = vst [vmem:[#allocation4] sm:$0xff] %v141_v19 }
  0xb0   : > { %v155_v23 = vld [vmem:[#allocation4 + $0x1] ss:$0 sm:$0xff]  ;;  %v165_v26 = vld [vmem:[#allocation4 + $0x2] ss:$0 sm:$0xff]  ;;  %v175_v31 = vld [vmem:[#allocation4 + $0x3] ss:$0 sm:$0xff] }
  0xb1   : > { %v156_v24 = vxor.u32 2147483648, %v155_v23  ;;  %v166_v28 = vxor.u32 2147483648, %v165_v26  ;;  %v176_v33 = vxor.u32 2147483648, %v175_v31 }
  0xb3   : > { %v160_v25 = vmul.f32 %v156_v24, %v153_v22 }
  0xb5   : > { %161 = vadd.xlane.f32.xlu0 %v160_v25 }
 0x128   : > { %v162_v27 = vpop.xlane.xlu0 %161 }
 0x129   : > { %v163_v29 = vsel %vm159_vm10, %v162_v27, %v153_v22 }
 0x12a   : > { %v170_v30 = vmul.f32 %v166_v28, %v163_v29 }
 0x12c   : > { %171 = vadd.xlane.f32.xlu1 %v170_v30 }
 0x19f   : > { %v172_v32 = vpop.xlane.xlu1 %171 }
 0x1a0   : > { %v173_v34 = vsel %vm169_vm11, %v172_v32, %v163_v29 }
 0x1a1   : > { %v180_v35 = vmul.f32 %v176_v33, %v173_v34 }
 0x1a3   : > { %181 = vadd.xlane.f32.xlu1 %v180_v35 }
 0x216   : > { %v182_v36 = vpop.xlane.xlu1 %181 }
 0x217   : > { %v183_v37 = vsel %vm179_vm12, %v182_v36, %v173_v34 }
 0x218   : > { %v198_v38 = vmul.f32 %v183_v37, %v140_v18 }
 0x21a   : > { %v200_v39 = vsel %vm132_vm5, %v183_v37, %v198_v38 }
 0x21b   : > { %201 = vst [vmem:[#allocation2] sm:$0xff] %v200_v39 }
 0x222   : > { %v204_v40 = vld [vmem:[#allocation2] sm:$0xf] }
 0x223   : > { %207 = vst [vmem:[%s108_s21] sm:$0xf] %v204_v40 }
 0x22a   : > { %v233_v41 = vld [vmem:[%s108_s21] sm:$0xf] }
 0x22b   : > { %234 = vst [vmem:[%s216_s25] sm:$0xf] %v233_v41 }
 0x22c PF: > { %s7_s8 = sadd.s32 1, %s370_s8   ;;  %s434_s6 = smov %s366_s7 }
 0x22d   : > { %p4_p5 = scmp.ge.s32.totalorder %s7_s8, 4   ;;  %s435_s7 = smov %s437_s10 }
 0x22f   :  { %6 = sbr.rel (!%p4_p5) target bundleno = 2 (0x2), region = 113 }

// kernel: custom-call.12
= control target key start
LH: loop header
LB: loop body
LE: loop exit
PB: predicated region body
PF: predicated region fallthrough
CT: control target
= control target key end

     0   :  { %s382_s6 = smov 0   ;;  %s384_s7 = smov 0   ;;  %s431_s0 = inlined_call_operand.vmem [shape: f32[2,1,4,4], index: 0, kind: input, shape index: {}]   ;;  %s432_s1 = inlined_call_operand.vmem [shape: f32[2,1,4,4], index: 1, kind: output, shape index: {}]  }
   0x1   :  { %s386_s8 = smov 0  }
   0x2 LB: > { %s308_s9 = sadd.s32 4294967295, %s369_s8   ;;  %s33_s10 = sadd.s32 1, %s365_s7  ;;  %s369_s8 = sphi %s386_s8, %s7_s8   ;;  %s365_s7 = sphi %s384_s7, %s434_s7   ;;  %s361_s6 = sphi %s382_s6, %s433_s6  }
   0x3   : > { %p35_p0 = scmp.ge.s32.totalorder %s33_s10, 2  ;;  %p310_p1 = scmp.ge.s32.totalorder %s369_s8, 2 }
   0x4   : > { %s49_s11 = sand.u32 (!%p310_p1), 1, %s369_s8   ;;  %s312_s12 = sshll.u32 (!%p310_p1), %s365_s7, 2 }
   0x5   : > { %s436_s10 = smov (%p35_p0, %s33_s10), 0  ;;  %47 = sbr.rel (%p310_p1) target bundleno = 12 (0xc), region = 16 }
   0x6   : > { %s311_s13 = sshll.u32 (!%p310_p1), %s49_s11, 2  ;;  %s56_s16 = scalar_lea.vmem (!%p310_p1), %s431_s0, %s312_s12 }
   0x7   : > { %s51_s17 = scalar_lea.vmem (!%p310_p1), [#allocation1], %s311_s13 }
   0xa   : > { %v73_v0 = vld [vmem:[%s56_s16] sm:$0xf] }
   0xb   : > { %74 = vst [vmem:[%s51_s17] sm:$0xf] %v73_v0 }
   0xc PF: > { %p313_p2 = scmp.ge.s32.totalorder %s369_s8, 1  ;;  %p91_p3 = scmp.lt.s32.totalorder %s369_s8, 3 }
   0xe   : > { %p92_p4 = pnand %p313_p2, %p91_p3 }
  0x10   : > { %95 = sbr.rel (%p92_p4) target bundleno = 556 (0x22c), region = 50 }
  0x15   : > { %s409_s18 = sand.u32 1, %s308_s9   ;;  %v113_v1 = vlaneseq  ;;  %v371_v20 = vmov -1.0   ;;  %s317_s22 = sshll.u32 %s361_s6, 2 }
  0x16   : > { %s314_s19 = sshll.u32 %s409_s18, 2  ;;  %s215_s25 = scalar_lea.vmem %s432_s1, %s317_s22 }
  0x17   : > { %s104_s20 = scalar_lea.vmem [#allocation1], %s314_s19  ;;  %v114_v3 = vand.u32 127, %v113_v1  ;;  %v117_v4 = vshrl.u32 %v113_v1, 7  ;;  %s108_s21 = scalar_lea.vmem [#allocation3], %s314_s19 }
  0x18   : > { %v111_v2 = vld [vmem:[%s104_s20] sm:$0xf] }
  0x19   : > { %112 = vst [vmem:[#allocation0] sm:$0xf] %v111_v2  ;;  %vm119_vm0 = vcmp.eq.s32.totalorder %v117_v4, %v114_v3  ;;  %vm115_vm1 = vcmp.lt.s32.totalorder %v114_v3, 4  ;;  %vm124_vm2 = vcmp.le.s32.totalorder %v117_v4, %v114_v3  ;;  %vm151_vm8 = vcmp.eq.s32.totalorder %v114_v3, 3 }
  0x1a   : > { %vm125_vm3 = vmand %vm124_vm2, %vm115_vm1  ;;  %vm148_vm9 = vcmp.eq.s32.totalorder %v114_v3, %v117_v4  ;;  %v152_v21 = vsel %vm151_vm8, 1.0, %v371_v20  ;;  %vm159_vm10 = vcmp.eq.s32.totalorder %v114_v3, 2  ;;  %vm169_vm11 = vcmp.eq.s32.totalorder %v114_v3, 1 }
  0x1b   : > { %v153_v22 = vsel %vm148_vm9, %v152_v21, 0.0  ;;  %vm178_vm12 = vcmp.eq.s32.totalorder %v114_v3, 0 }
  0x20   : > { %v120_v5 = vld [vmem:[#allocation0] sm:$0xff] }
  0x21   : > { %v121_v6 = vsel %vm119_vm0, %v120_v5, 0.0  ;;  %v126_v15 = vsel %vm125_vm3, %v120_v5, 0.0 }
  0x22   : > { %122 = vadd.xlane.f32.xlu0 %v121_v6 }
  0x95   : > { %v123_v7 = vpop.xlane.xlu0 %122 }
  0x96   : > { %345 = vrcp.f32 %v123_v7  ;;  %v138_v11 = vand.u32 2147483648, %v123_v7  ;;  %v136_v13 = vand.u32 2147483647, %v123_v7  ;;  %vm132_vm5 = vweird.f32 %v123_v7 }
  0x98   : > { %v139_v16 = vor.u32 1.1754944e-38, %v138_v11  ;;  %vm137_vm7 = vcmp.eq.f32.partialorder %v136_v13, 8.507059e+37 }
  0x9c   : > { %v346_v8 = vpop.eup %345 }
  0x9d   : > { %v128_v9 = vmul.f32 %v346_v8, %v123_v7  ;;  %vm133_vm4 = vweird.f32 %v346_v8 }
  0x9e   : > { %vm134_vm6 = vmor %vm132_vm5, %vm133_vm4 }
  0x9f   : > { %v129_v10 = vsub.f32 1.0, %v128_v9 }
  0xa1   : > { %v130_v12 = vmul.f32 %v346_v8, %v129_v10 }
  0xa3   : > { %v131_v14 = vadd.f32 %v346_v8, %v130_v12 }
  0xa5   : > { %v135_v17 = vsel %vm134_vm6, %v346_v8, %v131_v14 }
  0xa6   : > { %v140_v18 = vsel %vm137_vm7, %v139_v16, %v135_v17 }
  0xa7   : > { %v141_v19 = vmul.f32 %v140_v18, %v126_v15 }
  0xa9   : > { %142 = vst [vmem:[#allocation4] sm:$0xff] %v141_v19 }
  0xb0   : > { %v155_v23 = vld [vmem:[#allocation4 + $0x2] ss:$0 sm:$0xff]  ;;  %v165_v26 = vld [vmem:[#allocation4 + $0x1] ss:$0 sm:$0xff]  ;;  %v174_v31 = vld [vmem:[#allocation4] ss:$0 sm:$0xff] }
  0xb1   : > { %v156_v24 = vxor.u32 2147483648, %v155_v23  ;;  %v166_v28 = vxor.u32 2147483648, %v165_v26  ;;  %v175_v33 = vxor.u32 2147483648, %v174_v31 }
  0xb3   : > { %v160_v25 = vmul.f32 %v156_v24, %v153_v22 }
  0xb5   : > { %161 = vadd.xlane.f32.xlu0 %v160_v25 }
 0x128   : > { %v162_v27 = vpop.xlane.xlu0 %161 }
 0x129   : > { %v163_v29 = vsel %vm159_vm10, %v162_v27, %v153_v22 }
 0x12a   : > { %v170_v30 = vmul.f32 %v166_v28, %v163_v29 }
 0x12c   : > { %171 = vadd.xlane.f32.xlu1 %v170_v30 }
 0x19f   : > { %v172_v32 = vpop.xlane.xlu1 %171 }
 0x1a0   : > { %v173_v34 = vsel %vm169_vm11, %v172_v32, %v163_v29 }
 0x1a1   : > { %v179_v35 = vmul.f32 %v175_v33, %v173_v34 }
 0x1a3   : > { %180 = vadd.xlane.f32.xlu1 %v179_v35 }
 0x216   : > { %v181_v36 = vpop.xlane.xlu1 %180 }
 0x217   : > { %v182_v37 = vsel %vm178_vm12, %v181_v36, %v173_v34 }
 0x218   : > { %v197_v38 = vmul.f32 %v182_v37, %v140_v18 }
 0x21a   : > { %v199_v39 = vsel %vm132_vm5, %v182_v37, %v197_v38 }
 0x21b   : > { %200 = vst [vmem:[#allocation2] sm:$0xff] %v199_v39 }
 0x222   : > { %v203_v40 = vld [vmem:[#allocation2] sm:$0xf] }
 0x223   : > { %206 = vst [vmem:[%s108_s21] sm:$0xf] %v203_v40 }
 0x22a   : > { %v232_v41 = vld [vmem:[%s108_s21] sm:$0xf] }
 0x22b   : > { %233 = vst [vmem:[%s215_s25] sm:$0xf] %v232_v41 }
 0x22c PF: > { %s7_s8 = sadd.s32 1, %s369_s8   ;;  %s433_s6 = smov %s365_s7 }
 0x22d   : > { %p4_p5 = scmp.ge.s32.totalorder %s7_s8, 4   ;;  %s434_s7 = smov %s436_s10 }
 0x22f   :  { %6 = sbr.rel (!%p4_p5) target bundleno = 2 (0x2), region = 112 }

// kernel: sphere_init_multiview_forward.5
= control target key start
LH: loop header
LB: loop body
LE: loop exit
PB: predicated region body
PF: predicated region fallthrough
CT: control target
= control target key end

     0   :  { %s1081_s12 = smov 0   ;;  %s1323_s0 = inlined_call_operand.vmem [shape: bf16[256,384], index: 0, kind: input, shape index: {}]   ;;  %s1324_s1 = inlined_call_operand.vmem [shape: bf16[384,128], index: 1, kind: input, shape index: {}]   ;;  %s1325_s2 = inlined_call_operand.vmem [shape: f32[1,128], index: 2, kind: input, shape index: {}]   ;;  %s1326_s3 = inlined_call_operand.vmem [shape: f32[256,128], index: 3, kind: output, shape index: {}]  }
   0x1 LB: > { %s768_s13 = sadd.s32 4294967295, %s1059_s12   ;;  %p772_p0 = scmp.ge.s32.totalorder %s1059_s12, 1  ;;  %s1059_s12 = sphi %s1081_s12, %s13_s12  }
   0x2   : > { %p139_p1 = scmp.lt.s32.totalorder %s1059_s12, 3 }
   0x4   : > { %p140_p2 = pnand %p772_p0, %p139_p1 }
   0x5   : > { %s773_s5 = sshll.u32 (!%p140_p2), %s768_s13, 4 }
   0x6   : > { %143 = sbr.rel (%p140_p2) target bundleno = 270 (0x10e), region = 32  ;;  %p165_p3 = scmp.lt.s32.totalorder (!%p140_p2), %s773_s5, 31 }
   0xb   : > { %v1002_v0 = vld [vmem:[%s1324_s1 + $0x38] sm:$0xff]  ;;  %v1001_v3 = vld [vmem:[%s1324_s1 + $0x30] sm:$0xff]  ;;  %v1000_v6 = vld [vmem:[%s1324_s1 + $0x28] sm:$0xff]  ;;  %s1328_s5 = smov (!%p165_p3, %s773_s5), 31 }
   0xc   : > { %v1095_v1 = vld [vmem:[%s1324_s1 + $0x78] sm:$0xff]  ;;  %533 = vmatpush.bf16.msra.mxu0 %v1002_v0  ;;  %1019 = vmatpush.bf16.msra.mxu3 %v1002_v0  ;;  %v1110_v4 = vld [vmem:[%s1324_s1 + $0x70] sm:$0xff]  ;;  %v1125_v7 = vld [vmem:[%s1324_s1 + $0x68] sm:$0xff]  ;;  %s1043_s21 = smul.u32 12, %s1328_s5  ;;  %s776_s18 = sshll.u32 %s1328_s5, 3 }
   0xd   : > { %v1100_v2 = vld [vmem:[%s1324_s1 + $0xb8] sm:$0xff]  ;;  %582 = vmatpush.bf16.msra.mxu1 %v1095_v1  ;;  %v1115_v5 = vld [vmem:[%s1324_s1 + $0xb0] sm:$0xff]  ;;  %v1130_v8 = vld [vmem:[%s1324_s1 + $0xa8] sm:$0xff] }
   0xe   : > { %631 = vmatpush.bf16.msra.mxu2 %v1100_v2  ;;  %v999_v9 = vld [vmem:[%s1324_s1 + $0x20] sm:$0xff]  ;;  %v998_v12 = vld [vmem:[%s1324_s1 + $0x18] sm:$0xff]  ;;  %v997_v15 = vld [vmem:[%s1324_s1 + $0x10] sm:$0xff]  ;;  %s1181_s30 = scalar_lea.vmem %s1323_s0, %s1043_s21  ;;  %s1277_s21 = scalar_lea.vmem %s1326_s3, %s776_s18 }
   0xf   : > { %v1140_v10 = vld [vmem:[%s1324_s1 + $0x60] sm:$0xff]  ;;  %v1006_v13 = vld [vmem:[%s1324_s1 + $0x58] sm:$0xff]  ;;  %v1005_v16 = vld [vmem:[%s1324_s1 + $0x50] sm:$0xff] }
  0x10   : > { %534 = vmatpush.bf16.msra.mxu0 %v1001_v3  ;;  %1020 = vmatpush.bf16.msra.mxu3 %v1001_v3  ;;  %v1145_v11 = vld [vmem:[%s1324_s1 + $0xa0] sm:$0xff]  ;;  %v1160_v14 = vld [vmem:[%s1324_s1 + $0x98] sm:$0xff]  ;;  %v1173_v17 = vld [vmem:[%s1324_s1 + $0x90] sm:$0xff] }
  0x11   : > { %583 = vmatpush.bf16.msra.mxu1 %v1110_v4  ;;  %v996_v18 = vld [vmem:[%s1324_s1 + $0x8] sm:$0xff]  ;;  %v995_v21 = vld [vmem:[%s1324_s1] sm:$0xff]  ;;  %v851_v26 = vld [vmem:[%s1181_s30 + $0x90] sm:$0xf] }
  0x12   : > { %632 = vmatpush.bf16.msra.mxu2 %v1115_v5  ;;  %v1004_v19 = vld [vmem:[%s1324_s1 + $0x48] sm:$0xff]  ;;  %v1003_v22 = vld [vmem:[%s1324_s1 + $0x40] sm:$0xff]  ;;  %v990_v27 = vld [vmem:[%s1181_s30 + $0x98] sm:$0xf0] }
  0x13   : > { %v1190_v20 = vld [vmem:[%s1324_s1 + $0x88] sm:$0xff]  ;;  %v1201_v23 = vld [vmem:[%s1324_s1 + $0x80] sm:$0xff]  ;;  %v781_v29 = vld [vmem:[%s1181_s30 + $0xc] sm:$0xf0]  ;;  %v852_v33 = vor.u32 %v990_v27, %v851_v26 }
  0x14   : > { %535 = vmatpush.bf16.msra.mxu0 %v1000_v6  ;;  %1021 = vmatpush.bf16.msra.mxu3 %v1000_v6  ;;  %v779_v24 = vld [vmem:[%s1181_s30] sm:$0xf]  ;;  %v972_v25 = vld [vmem:[%s1181_s30 + $0x8] sm:$0xf0]  ;;  %v971_v28 = vld [vmem:[%s1181_s30 + $0x4] sm:$0xf] }
  0x15   : > { %584 = vmatpush.bf16.msra.mxu1 %v1125_v7  ;;  %v787_v30 = vld [vmem:[%s1181_s30 + $0x8] sm:$0xf]  ;;  %v973_v31 = vld [vmem:[%s1181_s30 + $0x10] sm:$0xf0]  ;;  %v780_v32 = vor.u32 %v972_v25, %v779_v24  ;;  %v784_v34 = vor.u32 %v971_v28, %v781_v29  ;;  %v791_v36 = vld [vmem:[%s1181_s30 + $0x18] sm:$0xf] }
  0x16   : > { %633 = vmatpush.bf16.msra.mxu2 %v1130_v8  ;;  %v788_v35 = vor.u32 %v973_v31, %v787_v30  ;;  %v975_v37 = vld [vmem:[%s1181_s30 + $0x20] sm:$0xf0]  ;;  %v863_v38 = vld [vmem:[%s1181_s30 + $0xa8] sm:$0xf]  ;;  %v993_v39 = vld [vmem:[%s1181_s30 + $0xb0] sm:$0xf0] }
  0x17   : > { %v974_v40 = vld [vmem:[%s1181_s30 + $0x1c] sm:$0xf]  ;;  %v793_v41 = vld [vmem:[%s1181_s30 + $0x24] sm:$0xf0]  ;;  %v799_v42 = vld [vmem:[%s1181_s30 + $0x20] sm:$0xf]  ;;  %v792_v44 = vor.u32 %v975_v37, %v791_v36  ;;  %v864_v45 = vor.u32 %v993_v39, %v863_v38 }
  0x18   : > { %536 = vmatpush.bf16.msra.mxu0 %v999_v9  ;;  %1022 = vmatpush.bf16.msra.mxu3 %v999_v9  ;;  %v976_v43 = vld [vmem:[%s1181_s30 + $0x28] sm:$0xf0]  ;;  %v796_v46 = vor.u32 %v974_v40, %v793_v41  ;;  %v803_v48 = vld [vmem:[%s1181_s30 + $0x30] sm:$0xf]  ;;  %v978_v49 = vld [vmem:[%s1181_s30 + $0x38] sm:$0xf0] }
  0x19   : > { %585 = vmatpush.bf16.msra.mxu1 %v1140_v10  ;;  %v800_v47 = vor.u32 %v976_v43, %v799_v42  ;;  %v977_v50 = vld [vmem:[%s1181_s30 + $0x34] sm:$0xf]  ;;  %v853_v52 = vld [vmem:[%s1181_s30 + $0x9c] sm:$0xf0]  ;;  %v811_v54 = vld [vmem:[%s1181_s30 + $0x38] sm:$0xf]  ;;  %v804_v56 = vor.u32 %v978_v49, %v803_v48 }
  0x1a   : > { %634 = vmatpush.bf16.msra.mxu2 %v1145_v11  ;;  %v989_v51 = vld [vmem:[%s1181_s30 + $0x94] sm:$0xf]  ;;  %v805_v53 = vld [vmem:[%s1181_s30 + $0x3c] sm:$0xf0]  ;;  %v979_v55 = vld [vmem:[%s1181_s30 + $0x40] sm:$0xf0] }
  0x1b   : > { %v856_v57 = vor.u32 %v989_v51, %v853_v52  ;;  %v808_v58 = vor.u32 %v977_v50, %v805_v53  ;;  %v812_v59 = vor.u32 %v979_v55, %v811_v54  ;;  %v815_v60 = vld [vmem:[%s1181_s30 + $0x48] sm:$0xf]  ;;  %v981_v61 = vld [vmem:[%s1181_s30 + $0x50] sm:$0xf0]  ;;  %v980_v62 = vld [vmem:[%s1181_s30 + $0x4c] sm:$0xf] }
  0x1c   : > { %537 = vmatpush.bf16.msra.mxu0 %v998_v12  ;;  %1023 = vmatpush.bf16.msra.mxu3 %v998_v12  ;;  %v992_v63 = vld [vmem:[%s1181_s30 + $0xac] sm:$0xf]  ;;  %v865_v0 = vld [vmem:[%s1181_s30 + $0xb4] sm:$0xf0]  ;;  %v982_v3 = vld [vmem:[%s1181_s30 + $0x58] sm:$0xf0] }
  0x1d   : > { %586 = vmatpush.bf16.msra.mxu1 %v1006_v13  ;;  %v868_v6 = vor.u32 %v992_v63, %v865_v0  ;;  %v984_v9 = vld [vmem:[%s1181_s30 + $0x68] sm:$0xf0]  ;;  %v991_v12 = vld [vmem:[%s1181_s30 + $0xa0] sm:$0xf0]  ;;  %v871_v24 = vld [vmem:[%s1181_s30 + $0xb0] sm:$0xf] }
  0x1e   : > { %635 = vmatpush.bf16.msra.mxu2 %v1160_v14  ;;  %v841_v25 = vld [vmem:[%s1181_s30 + $0x84] sm:$0xf0]  ;;  %v847_v26 = vld [vmem:[%s1181_s30 + $0x80] sm:$0xf]  ;;  %v988_v27 = vld [vmem:[%s1181_s30 + $0x88] sm:$0xf0] }
  0x1f   : > { %v848_v31 = vor.u32 %v988_v27, %v847_v26 }
  0x20   : > { %538 = vmatpush.bf16.msra.mxu0 %v997_v15  ;;  %1024 = vmatpush.bf16.msra.mxu3 %v997_v15  ;;  %v985_v15 = vld [vmem:[%s1181_s30 + $0x70] sm:$0xf0] }
  0x21   : > { %587 = vmatpush.bf16.msra.mxu1 %v1005_v16 }
  0x22   : > { %636 = vmatpush.bf16.msra.mxu2 %v1173_v17 }
  0x24   : > { %539 = vmatpush.bf16.msra.mxu0 %v996_v18  ;;  %1025 = vmatpush.bf16.msra.mxu3 %v996_v18 }
  0x25   : > { %588 = vmatpush.bf16.msra.mxu1 %v1004_v19 }
  0x26   : > { %637 = vmatpush.bf16.msra.mxu2 %v1190_v20 }
  0x28   : > { %540 = vmatpush.bf16.msra.mxu0 %v995_v21  ;;  %1026 = vmatpush.bf16.msra.mxu3 %v995_v21  ;;  %v987_v21 = vld [vmem:[%s1181_s30 + $0x80] sm:$0xf0] }
  0x29   : > { %589 = vmatpush.bf16.msra.mxu1 %v1003_v22 }
  0x2a   : > { %638 = vmatpush.bf16.msra.mxu2 %v1201_v23 }
  0x2b   : > { %541 = vmatmul.bf16.vlgmr.msra.gmra.mxu0 %v780_v32  ;;  %571 = vmatmul.bf16.vlgmr.msra.gmra.mxu3 %v852_v33  ;;  %v1268_v32 = vld [vmem:[%s1325_s2] ss:$0 sm:$0xff] }
  0x2c   : > { %1027 = vmatpush.bf16.msrb.mxu3 %v1095_v1  ;;  %590 = vmatmul.bf16.vlgmr.msra.gmra.mxu1 %v784_v34  ;;  %v817_v1 = vld [vmem:[%s1181_s30 + $0x54] sm:$0xf0] }
  0x2d   : > { %639 = vmatmul.bf16.vlgmr.msra.gmra.mxu2 %v788_v35 }
  0x30   : > { %1028 = vmatpush.bf16.msrb.mxu3 %v1110_v4  ;;  %v816_v4 = vor.u32 %v981_v61, %v815_v60 }
  0x34   : > { %1029 = vmatpush.bf16.msrb.mxu3 %v1125_v7 }
  0x38   : > { %1030 = vmatpush.bf16.msrb.mxu3 %v1140_v10  ;;  %v983_v10 = vld [vmem:[%s1181_s30 + $0x64] sm:$0xf] }
  0x3b   : > { %546 = vmatmul.bf16.gmra.mxu0 %v792_v44  ;;  %576 = vmatmul.bf16.gmra.mxu3 %v864_v45 }
  0x3c   : > { %1031 = vmatpush.bf16.msrb.mxu3 %v1006_v13  ;;  %595 = vmatmul.bf16.gmra.mxu1 %v796_v46  ;;  %v829_v13 = vld [vmem:[%s1181_s30 + $0x6c] sm:$0xf0] }
  0x3d   : > { %644 = vmatmul.bf16.gmra.mxu2 %v800_v47  ;;  %v832_v18 = vor.u32 %v983_v10, %v829_v13 }
  0x40   : > { %1032 = vmatpush.bf16.msrb.mxu3 %v1005_v16 }
  0x44   : > { %1033 = vmatpush.bf16.msrb.mxu3 %v1004_v19 }
  0x48   : > { %1034 = vmatpush.bf16.msrb.mxu3 %v1003_v22  ;;  %v986_v22 = vld [vmem:[%s1181_s30 + $0x7c] sm:$0xf] }
  0x49   : > { %v844_v30 = vor.u32 %v986_v22, %v841_v25 }
  0x4b   : > { %551 = vmatmul.bf16.gmra.mxu0 %v804_v56  ;;  %620 = vmatmul.bf16.vlgmr.msrb.gmra.mxu3 %v856_v57 }
  0x4c   : > { %1035 = vmatpush.bf16.msra.mxu3 %v1100_v2  ;;  %600 = vmatmul.bf16.gmra.mxu1 %v808_v58  ;;  %v823_v2 = vld [vmem:[%s1181_s30 + $0x50] sm:$0xf] }
  0x4d   : > { %649 = vmatmul.bf16.gmra.mxu2 %v812_v59  ;;  %v824_v7 = vor.u32 %v982_v3, %v823_v2 }
  0x50   : > { %1036 = vmatpush.bf16.msra.mxu3 %v1115_v5  ;;  %v820_v5 = vor.u32 %v980_v62, %v817_v1 }
  0x54   : > { %1037 = vmatpush.bf16.msra.mxu3 %v1130_v8  ;;  %v827_v8 = vld [vmem:[%s1181_s30 + $0x60] sm:$0xf] }
  0x55   : > { %v828_v16 = vor.u32 %v984_v9, %v827_v8 }
  0x58   : > { %1038 = vmatpush.bf16.msra.mxu3 %v1145_v11  ;;  %v859_v11 = vld [vmem:[%s1181_s30 + $0x98] sm:$0xf] }
  0x5b   : > { %556 = vmatmul.bf16.gmra.mxu0 %v816_v4  ;;  %625 = vmatmul.bf16.gmra.mxu3 %v868_v6 }
  0x5c   : > { %1039 = vmatpush.bf16.msra.mxu3 %v1160_v14  ;;  %605 = vmatmul.bf16.gmra.mxu1 %v820_v5  ;;  %v835_v14 = vld [vmem:[%s1181_s30 + $0x68] sm:$0xf] }
  0x5d   : > { %654 = vmatmul.bf16.gmra.mxu2 %v824_v7  ;;  %v836_v19 = vor.u32 %v985_v15, %v835_v14 }
  0x60   : > { %1040 = vmatpush.bf16.msra.mxu3 %v1173_v17  ;;  %v860_v17 = vor.u32 %v991_v12, %v859_v11 }
  0x64   : > { %1041 = vmatpush.bf16.msra.mxu3 %v1190_v20  ;;  %v839_v20 = vld [vmem:[%s1181_s30 + $0x78] sm:$0xf] }
  0x65   : > { %v840_v28 = vor.u32 %v987_v21, %v839_v20 }
  0x68   : > { %1042 = vmatpush.bf16.msra.mxu3 %v1201_v23  ;;  %v994_v23 = vld [vmem:[%s1181_s30 + $0xb8] sm:$0xf0] }
  0x69   : > { %v872_v29 = vor.u32 %v994_v23, %v871_v24 }
  0x6b   : > { %561 = vmatmul.bf16.gmra.mxu0 %v828_v16  ;;  %669 = vmatmul.bf16.vlgmr.msra.gmra.mxu3 %v860_v17 }
  0x6c   : > { %610 = vmatmul.bf16.gmra.mxu1 %v832_v18 }
  0x6d   : > { %659 = vmatmul.bf16.gmra.mxu2 %v836_v19 }
  0x7b   : > { %566 = vmatmul.bf16.gmra.mxu0 %v840_v28  ;;  %674 = vmatmul.bf16.gmra.mxu3 %v872_v29 }
  0x7c   : > { %615 = vmatmul.bf16.gmra.mxu1 %v844_v30 }
  0x7d   : > { %664 = vmatmul.bf16.gmra.mxu2 %v848_v31 }
  0xa8   : > { %v542_v33 = vpop.f32.mrf.mxu0 }
  0xa9   : > { %v543_v34 = vadd.f32 %v1268_v32, %v542_v33  ;;  %v591_v35 = vpop.f32.mrf.mxu1 }
  0xab   : > { %v592_v36 = vadd.f32 %v591_v35, %v543_v34 }
  0xae   : > { %v1271_v37 = vpop.f32.mrf.mxu3 }
  0xb0   : > { %v640_v38 = vpop.f32.mrf.mxu2  ;;  %v544_v40 = vpop.f32.mrf.mxu0 }
  0xb1   : > { %v641_v39 = vadd.f32 %v640_v38, %v592_v36  ;;  %v593_v41 = vpop.f32.mrf.mxu1  ;;  %v545_v43 = vadd.f32 %v1268_v32, %v544_v40  ;;  %v573_v38 = vadd.f32 %v1268_v32, %v1271_v37 }
  0xb3   : > { %v680_v42 = vmax.f32 %v641_v39, 0.0  ;;  %v594_v44 = vadd.f32 %v593_v41, %v545_v43 }
  0xb5   : > { %696 = vst [vmem:[%s1277_s21] sm:$0xff] %v680_v42 }
  0xb6   : > { %v1281_v45 = vpop.f32.mrf.mxu3 }
  0xb8   : > { %v642_v46 = vpop.f32.mrf.mxu2  ;;  %v547_v48 = vpop.f32.mrf.mxu0 }
  0xb9   : > { %v643_v47 = vadd.f32 %v642_v46, %v594_v44  ;;  %v548_v49 = vadd.f32 %v1268_v32, %v547_v48  ;;  %v596_v50 = vpop.f32.mrf.mxu1 }
  0xbb   : > { %v681_v51 = vmax.f32 %v643_v47, 0.0  ;;  %v597_v52 = vadd.f32 %v596_v50, %v548_v49 }
  0xbd   : > { %697 = vst [vmem:[%s1277_s21 + $0x8] sm:$0xff] %v681_v51  ;;  %v575_v51 = vadd.f32 %v1268_v32, %v1281_v45 }
  0xbe   : > { %v1285_v53 = vpop.f32.mrf.mxu3 }
  0xc0   : > { %v645_v54 = vpop.f32.mrf.mxu2  ;;  %v549_v56 = vpop.f32.mrf.mxu0 }
  0xc1   : > { %v646_v55 = vadd.f32 %v645_v54, %v597_v52  ;;  %v598_v57 = vpop.f32.mrf.mxu1  ;;  %v550_v59 = vadd.f32 %v1268_v32, %v549_v56 }
  0xc3   : > { %v682_v58 = vmax.f32 %v646_v55, 0.0  ;;  %v599_v60 = vadd.f32 %v598_v57, %v550_v59 }
  0xc5   : > { %698 = vst [vmem:[%s1277_s21 + $0x10] sm:$0xff] %v682_v58 }
  0xc6   : > { %v1289_v61 = vpop.f32.mrf.mxu3 }
  0xc8   : > { %v647_v62 = vpop.f32.mrf.mxu2  ;;  %v552_v0 = vpop.f32.mrf.mxu0 }
  0xc9   : > { %v648_v63 = vadd.f32 %v647_v62, %v599_v60  ;;  %v553_v1 = vadd.f32 %v1268_v32, %v552_v0  ;;  %v601_v2 = vpop.f32.mrf.mxu1 }
  0xcb   : > { %v683_v3 = vmax.f32 %v648_v63, 0.0  ;;  %v602_v4 = vadd.f32 %v601_v2, %v553_v1  ;;  %v578_v63 = vadd.f32 %v1268_v32, %v1285_v53  ;;  %v580_v53 = vadd.f32 %v1268_v32, %v1289_v61 }
  0xcd   : > { %699 = vst [vmem:[%s1277_s21 + $0x18] sm:$0xff] %v683_v3 }
  0xce   : > { %v621_v6 = vpop.f32.mrf.mxu3 }
  0xcf   : > { %v622_v40 = vadd.f32 %v621_v6, %v573_v38 }
  0xd0   : > { %v650_v5 = vpop.f32.mrf.mxu2  ;;  %v554_v8 = vpop.f32.mrf.mxu0 }
  0xd1   : > { %v651_v7 = vadd.f32 %v650_v5, %v602_v4  ;;  %v603_v9 = vpop.f32.mrf.mxu1  ;;  %v555_v11 = vadd.f32 %v1268_v32, %v554_v8 }
  0xd3   : > { %v684_v10 = vmax.f32 %v651_v7, 0.0  ;;  %v604_v12 = vadd.f32 %v603_v9, %v555_v11 }
  0xd5   : > { %700 = vst [vmem:[%s1277_s21 + $0x20] sm:$0xff] %v684_v10 }
  0xd6   : > { %v623_v13 = vpop.f32.mrf.mxu3 }
  0xd7   : > { %v624_v37 = vadd.f32 %v623_v13, %v575_v51 }
  0xd8   : > { %v652_v14 = vpop.f32.mrf.mxu2  ;;  %v557_v16 = vpop.f32.mrf.mxu0 }
  0xd9   : > { %v653_v15 = vadd.f32 %v652_v14, %v604_v12  ;;  %v558_v17 = vadd.f32 %v1268_v32, %v557_v16  ;;  %v606_v18 = vpop.f32.mrf.mxu1 }
  0xdb   : > { %v685_v19 = vmax.f32 %v653_v15, 0.0  ;;  %v607_v20 = vadd.f32 %v606_v18, %v558_v17 }
  0xdd   : > { %701 = vst [vmem:[%s1277_s21 + $0x28] sm:$0xff] %v685_v19 }
  0xde   : > { %v626_v21 = vpop.f32.mrf.mxu3 }
  0xdf   : > { %v627_v1 = vadd.f32 %v626_v21, %v578_v63 }
  0xe0   : > { %v655_v22 = vpop.f32.mrf.mxu2  ;;  %v559_v23 = vpop.f32.mrf.mxu0 }
  0xe1   : > { %v656_v24 = vadd.f32 %v655_v22, %v607_v20  ;;  %v608_v25 = vpop.f32.mrf.mxu1  ;;  %v560_v27 = vadd.f32 %v1268_v32, %v559_v23 }
  0xe3   : > { %v686_v26 = vmax.f32 %v656_v24, 0.0  ;;  %v609_v28 = vadd.f32 %v608_v25, %v560_v27 }
  0xe5   : > { %702 = vst [vmem:[%s1277_s21 + $0x30] sm:$0xff] %v686_v26 }
  0xe6   : > { %v628_v29 = vpop.f32.mrf.mxu3 }
  0xe7   : > { %v629_v10 = vadd.f32 %v628_v29, %v580_v53 }
  0xe8   : > { %v657_v30 = vpop.f32.mrf.mxu2  ;;  %v562_v33 = vpop.f32.mrf.mxu0 }
  0xe9   : > { %v658_v31 = vadd.f32 %v657_v30, %v609_v28  ;;  %v563_v34 = vadd.f32 %v1268_v32, %v562_v33  ;;  %v611_v35 = vpop.f32.mrf.mxu1 }
  0xeb   : > { %v687_v36 = vmax.f32 %v658_v31, 0.0  ;;  %v612_v39 = vadd.f32 %v611_v35, %v563_v34 }
  0xed   : > { %703 = vst [vmem:[%s1277_s21 + $0x38] sm:$0xff] %v687_v36 }
  0xee   : > { %v670_v41 = vpop.f32.mrf.mxu3 }
  0xef   : > { %v671_v43 = vadd.f32 %v670_v41, %v622_v40 }
  0xf0   : > { %v660_v42 = vpop.f32.mrf.mxu2  ;;  %v564_v46 = vpop.f32.mrf.mxu0 }
  0xf1   : > { %v661_v44 = vadd.f32 %v660_v42, %v612_v39  ;;  %v692_v47 = vmax.f32 %v671_v43, 0.0  ;;  %v613_v48 = vpop.f32.mrf.mxu1  ;;  %v565_v50 = vadd.f32 %v1268_v32, %v564_v46 }
  0xf3   : > { %v688_v49 = vmax.f32 %v661_v44, 0.0  ;;  %708 = vst [vmem:[%s1277_s21 + $0x60] sm:$0xff] %v692_v47  ;;  %v614_v52 = vadd.f32 %v613_v48, %v565_v50 }
  0xf5   : > { %704 = vst [vmem:[%s1277_s21 + $0x40] sm:$0xff] %v688_v49 }
  0xf6   : > { %v672_v54 = vpop.f32.mrf.mxu3 }
  0xf7   : > { %v673_v56 = vadd.f32 %v672_v54, %v624_v37 }
  0xf8   : > { %v662_v55 = vpop.f32.mrf.mxu2  ;;  %v567_v58 = vpop.f32.mrf.mxu0 }
  0xf9   : > { %v663_v57 = vadd.f32 %v662_v55, %v614_v52  ;;  %v693_v59 = vmax.f32 %v673_v56, 0.0  ;;  %v568_v60 = vadd.f32 %v1268_v32, %v567_v58  ;;  %v616_v45 = vpop.f32.mrf.mxu1 }
  0xfb   : > { %v689_v62 = vmax.f32 %v663_v57, 0.0  ;;  %709 = vst [vmem:[%s1277_s21 + $0x68] sm:$0xff] %v693_v59  ;;  %v617_v0 = vadd.f32 %v616_v45, %v568_v60 }
  0xfd   : > { %705 = vst [vmem:[%s1277_s21 + $0x48] sm:$0xff] %v689_v62 }
  0xfe   : > { %v675_v2 = vpop.f32.mrf.mxu3 }
  0xff   : > { %v676_v4 = vadd.f32 %v675_v2, %v627_v1 }
 0x100   : > { %v665_v3 = vpop.f32.mrf.mxu2  ;;  %v569_v5 = vpop.f32.mrf.mxu0 }
 0x101   : > { %v666_v6 = vadd.f32 %v665_v3, %v617_v0  ;;  %v694_v7 = vmax.f32 %v676_v4, 0.0  ;;  %v570_v9 = vadd.f32 %v1268_v32, %v569_v5  ;;  %v618_v11 = vpop.f32.mrf.mxu1 }
 0x103   : > { %v690_v8 = vmax.f32 %v666_v6, 0.0  ;;  %710 = vst [vmem:[%s1277_s21 + $0x70] sm:$0xff] %v694_v7  ;;  %v619_v12 = vadd.f32 %v618_v11, %v570_v9 }
 0x105   : > { %706 = vst [vmem:[%s1277_s21 + $0x50] sm:$0xff] %v690_v8 }
 0x106   : > { %v677_v13 = vpop.f32.mrf.mxu3 }
 0x107   : > { %v678_v15 = vadd.f32 %v677_v13, %v629_v10 }
 0x108   : > { %v667_v14 = vpop.f32.mrf.mxu2 }
 0x109   : > { %v668_v16 = vadd.f32 %v667_v14, %v619_v12  ;;  %v695_v17 = vmax.f32 %v678_v15, 0.0 }
 0x10b   : > { %v691_v18 = vmax.f32 %v668_v16, 0.0  ;;  %711 = vst [vmem:[%s1277_s21 + $0x78] sm:$0xff] %v695_v17 }
 0x10d   : > { %707 = vst [vmem:[%s1277_s21 + $0x58] sm:$0xff] %v691_v18 }
 0x10e PF: > { %s13_s12 = sadd.s32 1, %s1059_s12  }
 0x10f   : > { %p10_p4 = scmp.ge.s32.totalorder %s13_s12, 4  }
 0x111   :  { %12 = sbr.rel (!%p10_p4) target bundleno = 1 (0x1), region = 62 }

// kernel: div.9
= control target key start
LH: loop header
LB: loop body
LE: loop exit
PB: predicated region body
PF: predicated region fallthrough
CT: control target
= control target key end

     0   :  { %s73_s0 = inlined_call_operand.<no memory space> [shape: f32[], index: 0, kind: input, shape index: {}]   ;;  %s74_s1 = inlined_call_operand.hbm [shape: f32[2,42,2,1], index: 1, kind: output, shape index: {}]  }
   0x1   :  { %v2_v0 = vstv %s73_s0 }
   0x2   :  { %3 = vsyncpa [#allocation1], 0  ;;  %4 = vst [vmem:[#allocation0] sm:$0x1] %v2_v0  ;;  %s15_s1 = sshll.u32 %s74_s1, 4  ;;  %s54_s9 = smov [#allocation0]   ;;  %s16_s1 = int_to_ptr.hbm [resolvable:$true] %s15_s1 }
   0x3   :  { %6 = vst [vmem:[#allocation0 + $0x2] sm:$0x1] %v2_v0  ;;  %s13_s10 = sshll.u32 %s54_s9, 4  ;;  %s55_s11 = smov 16   ;;  %s14_s10 = int_to_ptr.vmem [resolvable:$true] %s13_s10 }
   0x4   :  { %8 = vst [vmem:[#allocation0 + $0x1] sm:$0x1] %v2_v0  ;;  %s56_s12 = smov 1  }
   0x5   :  { %10 = vst [vmem:[#allocation0 + $0x3] sm:$0x1] %v2_v0 }
   0x6   :  { %21 = dma.vmem_to_hbm [thread:$0]  %s14_s10, 64, %s16_s1, [#allocation1], %s55_s11, %s55_s11, %s56_s12  }
   0x7   :  { %52 = dma.done.wait [#allocation1], 64  }
   0x8   :  { %53 = vsyncadd [#allocation1], 4294967232 }
   0x9   :  { %24 = vsyncpa [#allocation1], 1 }

// kernel: sphere_init_multiview_forward.6
= control target key start
LH: loop header
LB: loop body
LE: loop exit
PB: predicated region body
PF: predicated region fallthrough
CT: control target
= control target key end

     0   :  { %s1556_s27 = smov 0   ;;  %s1912_s0 = inlined_call_operand.vmem [shape: f32[2,2,48,128], index: 0, kind: input, shape index: {}]   ;;  %s1913_s1 = inlined_call_operand.vmem [shape: f32[2,48,128], index: 1, kind: input, shape index: {}]   ;;  %s1914_s2 = inlined_call_operand.vmem [shape: bf16[4,128,128], index: 2, kind: input, shape index: {}]   ;;  %s1915_s3 = inlined_call_operand.vmem [shape: f32[1,128], index: 3, kind: input, shape index: {}]   ;;  %s1916_s4 = inlined_call_operand.vmem [shape: bf16[128,128], index: 4, kind: input, shape index: {}]   ;;  %s1917_s5 = inlined_call_operand.vmem [shape: f32[1,128], index: 5, kind: input, shape index: {}]   ;;  %s1918_s6 = inlined_call_operand.vmem [shape: bf16[128,128], index: 6, kind: input, shape index: {}]   ;;  %s1919_s7 = inlined_call_operand.vmem [shape: f32[1,128], index: 7, kind: input, shape index: {}]   ;;  %s1920_s8 = inlined_call_operand.vmem [shape: f32[2,48,128], index: 8, kind: output, shape index: {}]  }
   0x1 LB: > { %s1152_s28 = sadd.s32 4294967295, %s1509_s27   ;;  %p1156_p0 = scmp.ge.s32.totalorder %s1509_s27, 1  ;;  %s1509_s27 = sphi %s1556_s27, %s18_s27  }
   0x2   : > { %p272_p1 = scmp.lt.s32.totalorder %s1509_s27, 3 }
   0x4   : > { %p273_p2 = pnand %p1156_p0, %p272_p1 }
   0x5   : > { %p311_p3 = scmp.lt.s32.totalorder (!%p273_p2), %s1152_s28, 1 }
   0x6   : > { %276 = sbr.rel (%p273_p2) target bundleno = 543 (0x21f), region = 52 }
   0xb   : > { %v1417_v0 = vld [vmem:[%s1914_s2 + $0x78] sm:$0xff]  ;;  %v1416_v2 = vld [vmem:[%s1914_s2 + $0x70] sm:$0xff]  ;;  %s1922_s28 = smov (!%p311_p3, %s1152_s28), 1  ;;  %v1415_v4 = vld [vmem:[%s1914_s2 + $0x68] sm:$0xff] }
   0xc   : > { %v1409_v1 = vld [vmem:[%s1914_s2 + $0x38] sm:$0xff]  ;;  %1450 = vmatpush.bf16.msra.mxu2 %v1417_v0  ;;  %v1408_v3 = vld [vmem:[%s1914_s2 + $0x30] sm:$0xff]  ;;  %563 = vmatpush.bf16.msra.mxu0 %v1417_v0  ;;  %s1466_s15 = smul.u32 96, %s1922_s28  ;;  %v1407_v5 = vld [vmem:[%s1914_s2 + $0x28] sm:$0xff] }
   0xd   : > { %1458 = vmatpush.bf16.msra.mxu3 %v1409_v1  ;;  %635 = vmatpush.bf16.msra.mxu1 %v1409_v1  ;;  %v1414_v6 = vld [vmem:[%s1914_s2 + $0x60] sm:$0xff]  ;;  %v1413_v20 = vld [vmem:[%s1914_s2 + $0x58] sm:$0xff]  ;;  %v1412_v29 = vld [vmem:[%s1914_s2 + $0x50] sm:$0xff]  ;;  %s1467_s29 = smul.u32 48, %s1922_s28 }
   0xe   : > { %s1588_s22 = scalar_lea.vmem %s1912_s0, %s1466_s15  ;;  %v1406_v7 = vld [vmem:[%s1914_s2 + $0x20] sm:$0xff]  ;;  %v1405_v21 = vld [vmem:[%s1914_s2 + $0x18] sm:$0xff]  ;;  %v1404_v35 = vld [vmem:[%s1914_s2 + $0x10] sm:$0xff] }
   0xf   : > { %v1597_v8 = vld [vmem:[%s1588_s22] sm:$0xff]  ;;  %v1600_v9 = vld [vmem:[%s1588_s22 + $0x8] sm:$0xff]  ;;  %v1603_v10 = vld [vmem:[%s1588_s22 + $0x30] sm:$0xff]  ;;  %s1776_s14 = scalar_lea.vmem %s1913_s1, %s1467_s29  ;;  %s1895_s21 = scalar_lea.vmem %s1920_s8, %s1467_s29 }
  0x10   : > { %1451 = vmatpush.bf16.msra.mxu2 %v1416_v2  ;;  %564 = vmatpush.bf16.msra.mxu0 %v1416_v2  ;;  %v1606_v11 = vld [vmem:[%s1588_s22 + $0x38] sm:$0xff]  ;;  %v1609_v12 = vld [vmem:[%s1588_s22 + $0x10] sm:$0xff]  ;;  %v344_v13 = vadd.f32 %v1603_v10, %v1597_v8  ;;  %v1619_v16 = vld [vmem:[%s1588_s22 + $0x40] sm:$0xff] }
  0x11   : > { %1459 = vmatpush.bf16.msra.mxu3 %v1408_v3  ;;  %636 = vmatpush.bf16.msra.mxu1 %v1408_v3  ;;  %v345_v14 = vadd.f32 %v1606_v11, %v1600_v9  ;;  %v1616_v15 = vld [vmem:[%s1588_s22 + $0x18] sm:$0xff]  ;;  %v1622_v17 = vld [vmem:[%s1588_s22 + $0x48] sm:$0xff]  ;;  %v346_v18 = vadd.f32 %v1619_v16, %v1609_v12  ;;  %v330_v30 = vld [vmem:[%s1588_s22 + $0x20] sm:$0xff] }
  0x12   : > { %v1626_v19 = vmul.f32 0.5, %v344_v13  ;;  %v347_v23 = vadd.f32 %v1622_v17, %v1616_v15  ;;  %v336_v31 = vld [vmem:[%s1588_s22 + $0x50] sm:$0xff]  ;;  %v331_v36 = vld [vmem:[%s1588_s22 + $0x28] sm:$0xff]  ;;  %v337_v37 = vld [vmem:[%s1588_s22 + $0x58] sm:$0xff] }
  0x13   : > { %v1634_v22 = vmul.f32 0.5, %v345_v14  ;;  %v1640_v25 = vmul.f32 0.5, %v346_v18  ;;  %v348_v44 = vadd.f32 %v336_v31, %v330_v30  ;;  %v349_v48 = vadd.f32 %v337_v37, %v331_v36  ;;  %v1411_v52 = vld [vmem:[%s1914_s2 + $0x48] sm:$0xff]  ;;  %v1410_v0 = vld [vmem:[%s1914_s2 + $0x40] sm:$0xff]  ;;  %v1425_v3 = vld [vmem:[%s1914_s2 + $0xb8] sm:$0xff] }
  0x14   : > { %1452 = vmatpush.bf16.msra.mxu2 %v1415_v4  ;;  %565 = vmatpush.bf16.msra.mxu0 %v1415_v4  ;;  %v356_v24 = vsub.f32 %v1597_v8, %v1626_v19  ;;  %v362_v27 = vsub.f32 %v1603_v10, %v1626_v19  ;;  %v1653_v33 = vmul.f32 0.5, %v347_v23  ;;  %v1403_v53 = vld [vmem:[%s1914_s2 + $0x8] sm:$0xff]  ;;  %v342_v62 = vmax.f32 %v330_v30, %v336_v31  ;;  %v1402_v1 = vld [vmem:[%s1914_s2] sm:$0xff]  ;;  %v1433_v4 = vld [vmem:[%s1914_s2 + $0xf8] sm:$0xff] }
  0x15   : > { %1460 = vmatpush.bf16.msra.mxu3 %v1407_v5  ;;  %637 = vmatpush.bf16.msra.mxu1 %v1407_v5  ;;  %v357_v26 = vsub.f32 %v1600_v9, %v1634_v22  ;;  %v363_v28 = vsub.f32 %v1606_v11, %v1634_v22  ;;  %v358_v34 = vsub.f32 %v1609_v12, %v1640_v25  ;;  %v354_v60 = vmul.f32 0.5, %v348_v44  ;;  %v1424_v23 = vld [vmem:[%s1914_s2 + $0xb0] sm:$0xff] }
  0x16   : > { %v368_v32 = vmul.f32 %v356_v24, %v356_v24  ;;  %v374_v39 = vmul.f32 %v362_v27, %v362_v27  ;;  %v359_v41 = vsub.f32 %v1616_v15, %v1653_v33  ;;  %v364_v42 = vsub.f32 %v1619_v16, %v1640_v25 }
  0x17   : > { %v369_v38 = vmul.f32 %v357_v26, %v357_v26  ;;  %v375_v40 = vmul.f32 %v363_v28, %v363_v28  ;;  %v365_v43 = vsub.f32 %v1622_v17, %v1653_v33  ;;  %v370_v47 = vmul.f32 %v358_v34, %v358_v34 }
  0x18   : > { %1453 = vmatpush.bf16.msra.mxu2 %v1414_v6  ;;  %566 = vmatpush.bf16.msra.mxu0 %v1414_v6  ;;  %v380_v45 = vadd.f32 %v374_v39, %v368_v32  ;;  %v371_v49 = vmul.f32 %v359_v41, %v359_v41  ;;  %v376_v50 = vmul.f32 %v364_v42, %v364_v42  ;;  %v355_v61 = vmul.f32 0.5, %v349_v48  ;;  %v1422_v42 = vld [vmem:[%s1914_s2 + $0xa0] sm:$0xff] }
  0x19   : > { %1461 = vmatpush.bf16.msra.mxu3 %v1406_v7  ;;  %638 = vmatpush.bf16.msra.mxu1 %v1406_v7  ;;  %v381_v46 = vadd.f32 %v375_v40, %v369_v38  ;;  %v377_v51 = vmul.f32 %v365_v43, %v365_v43  ;;  %v343_v63 = vmax.f32 %v331_v36, %v337_v37  ;;  %v1430_v43 = vld [vmem:[%s1914_s2 + $0xe0] sm:$0xff] }
  0x1a   : > { %v386_v54 = vmul.f32 0.5, %v380_v45  ;;  %v382_v56 = vadd.f32 %v376_v50, %v370_v47  ;;  %v338_v6 = vmax.f32 %v1597_v8, %v1603_v10  ;;  %v339_v7 = vmax.f32 %v1600_v9, %v1606_v11  ;;  %v1432_v8 = vld [vmem:[%s1914_s2 + $0xf0] sm:$0xff]  ;;  %v1421_v50 = vld [vmem:[%s1914_s2 + $0x98] sm:$0xff] }
  0x1b   : > { %v387_v55 = vmul.f32 0.5, %v381_v46  ;;  %v383_v57 = vadd.f32 %v377_v51, %v371_v49  ;;  %v497_v13 = vpack.c.bf16 %v355_v61, %v354_v60  ;;  %v478_v14 = vpack.c.bf16 %v343_v63, %v342_v62  ;;  %v1429_v51 = vld [vmem:[%s1914_s2 + $0xd8] sm:$0xff] }
  0x1c   : > { %1454 = vmatpush.bf16.msra.mxu2 %v1413_v20  ;;  %567 = vmatpush.bf16.msra.mxu0 %v1413_v20  ;;  %v1674_v58 = vadd.f32 1e-08, %v386_v54  ;;  %v388_v2 = vmul.f32 0.5, %v382_v56  ;;  %v360_v18 = vsub.f32 %v330_v30, %v354_v60  ;;  %v366_v20 = vsub.f32 %v336_v31, %v354_v60 }
  0x1d   : > { %1462 = vmatpush.bf16.msra.mxu3 %v1405_v21  ;;  %639 = vmatpush.bf16.msra.mxu1 %v1405_v21  ;;  %v1676_v59 = vadd.f32 1e-08, %v387_v55  ;;  %v389_v5 = vmul.f32 0.5, %v383_v57  ;;  %v361_v10 = vsub.f32 %v331_v36, %v355_v61  ;;  %v367_v9 = vsub.f32 %v337_v37, %v355_v61 }
  0x1e   : > { %1479 = vrsqrt.f32 %v1674_v58  ;;  %v1696_v21 = vadd.f32 1e-08, %v388_v2  ;;  %v495_v26 = vpack.c.bf16 %v1634_v22, %v1626_v19  ;;  %v476_v27 = vpack.c.bf16 %v339_v7, %v338_v6  ;;  %v1423_v19 = vld [vmem:[%s1914_s2 + $0xa8] sm:$0xff] }
  0x1f   : > { %1481 = vrsqrt.f32 %v1676_v59  ;;  %v1704_v11 = vadd.f32 1e-08, %v389_v5  ;;  %v372_v30 = vmul.f32 %v360_v18, %v360_v18  ;;  %v378_v31 = vmul.f32 %v366_v20, %v366_v20  ;;  %v1431_v22 = vld [vmem:[%s1914_s2 + $0xe8] sm:$0xff]  ;;  %v1787_v20 = vld [vmem:[%s1776_s14] sm:$0xff] }
  0x20   : > { %1455 = vmatpush.bf16.msra.mxu2 %v1412_v29  ;;  %568 = vmatpush.bf16.msra.mxu0 %v1412_v29  ;;  %1483 = vrsqrt.f32 %v1696_v21  ;;  %v373_v34 = vmul.f32 %v361_v10, %v361_v10  ;;  %vm405_vm0 = vcmp.eq.f32.partialorder %v1674_v58, inf  ;;  %vm417_vm1 = vcmp.eq.f32.partialorder %v1676_v59, inf }
  0x21   : > { %1463 = vmatpush.bf16.msra.mxu3 %v1404_v35  ;;  %640 = vmatpush.bf16.msra.mxu1 %v1404_v35  ;;  %v379_v35 = vmul.f32 %v367_v9, %v367_v9  ;;  %1485 = vrsqrt.f32 %v1704_v11  ;;  %v384_v39 = vadd.f32 %v378_v31, %v372_v30  ;;  %vm407_vm2 = vcmp.eq.f32.partialorder %v1674_v58, 0.0 }
  0x22   : > { %v408_v2 = vand.u32 2147483648, %v1674_v58  ;;  %vm419_vm3 = vcmp.eq.f32.partialorder %v1676_v59, 0.0  ;;  %vm429_vm4 = vcmp.eq.f32.partialorder %v1696_v21, inf  ;;  %vm441_vm5 = vcmp.eq.f32.partialorder %v1704_v11, inf }
  0x23   : > { %v385_v41 = vadd.f32 %v379_v35, %v373_v34  ;;  %v390_v48 = vmul.f32 0.5, %v384_v39  ;;  %vm431_vm6 = vcmp.eq.f32.partialorder %v1696_v21, 0.0  ;;  %vm443_vm7 = vcmp.eq.f32.partialorder %v1704_v11, 0.0 }
  0x24   : > { %1456 = vmatpush.bf16.msra.mxu2 %v1411_v52  ;;  %569 = vmatpush.bf16.msra.mxu0 %v1411_v52  ;;  %v1480_v24 = vpop.eup %1479  ;;  %v340_v52 = vmax.f32 %v1609_v12, %v1619_v16  ;;  %v1420_v12 = vld [vmem:[%s1914_s2 + $0x90] sm:$0xff]  ;;  %v496_v16 = vpack.c.bf16 %v1653_v33, %v1640_v25  ;;  %v1419_v25 = vld [vmem:[%s1914_s2 + $0x88] sm:$0xff] }
  0x25   : > { %1464 = vmatpush.bf16.msra.mxu3 %v1403_v53  ;;  %641 = vmatpush.bf16.msra.mxu1 %v1403_v53  ;;  %v1482_v28 = vpop.eup %1481  ;;  %v399_v29 = vmul.f32 %v1480_v24, %v1674_v58  ;;  %v391_v49 = vmul.f32 0.5, %v385_v41  ;;  %v341_v53 = vmax.f32 %v1616_v15, %v1622_v17  ;;  %v1739_v60 = vadd.f32 1e-08, %v390_v48  ;;  %v1428_v15 = vld [vmem:[%s1914_s2 + $0xd0] sm:$0xff]  ;;  %v1427_v33 = vld [vmem:[%s1914_s2 + $0xc8] sm:$0xff] }
  0x26   : > { %v411_v32 = vmul.f32 %v1482_v28, %v1676_v59  ;;  %v1724_v44 = vpop.eup %1483 }
  0x27   : > { %v400_v36 = vmul.f32 %v1480_v24, %v399_v29  ;;  %v1486_v47 = vpop.eup %1485  ;;  %v423_v56 = vmul.f32 %v1724_v44, %v1696_v21  ;;  %v1741_v61 = vadd.f32 1e-08, %v391_v49  ;;  %v477_v17 = vpack.c.bf16 %v341_v53, %v340_v52 }
  0x28   : > { %1457 = vmatpush.bf16.msra.mxu2 %v1410_v0  ;;  %570 = vmatpush.bf16.msra.mxu0 %v1410_v0  ;;  %v412_v37 = vmul.f32 %v1482_v28, %v411_v32  ;;  %v435_v57 = vmul.f32 %v1486_v47, %v1704_v11  ;;  %1487 = vrsqrt.f32 %v1739_v60  ;;  %vm453_vm8 = vcmp.eq.f32.partialorder %v1739_v60, inf }
  0x29   : > { %1465 = vmatpush.bf16.msra.mxu3 %v1402_v1  ;;  %642 = vmatpush.bf16.msra.mxu1 %v1402_v1  ;;  %v401_v38 = vmul.f32 0.5, %v400_v36  ;;  %v424_v0 = vmul.f32 %v1724_v44, %v423_v56  ;;  %1489 = vrsqrt.f32 %v1741_v61  ;;  %vm465_vm9 = vcmp.eq.f32.partialorder %v1741_v61, inf  ;;  %v1826_v56 = vld [vmem:[%s1776_s14 + $0x20] sm:$0xff] }
  0x2a   : > { %v413_v40 = vmul.f32 0.5, %v412_v37  ;;  %v436_v1 = vmul.f32 %v1486_v47, %v435_v57  ;;  %vm455_vm10 = vcmp.eq.f32.partialorder %v1739_v60, 0.0  ;;  %vm467_vm11 = vcmp.eq.f32.partialorder %v1741_v61, 0.0  ;;  %v1829_v57 = vld [vmem:[%s1776_s14 + $0x28] sm:$0xff] }
  0x2b   : > { %581 = vmatmul.bf16.vlgmr.msra.gmra.mxu2 %v497_v13  ;;  %571 = vmatmul.bf16.vlgmr.msra.gmra.mxu0 %v495_v26  ;;  %v402_v45 = vsub.f32 1.5, %v401_v38  ;;  %v425_v6 = vmul.f32 0.5, %v424_v0  ;;  %v1418_v13 = vld [vmem:[%s1914_s2 + $0x80] sm:$0xff]  ;;  %v1435_v0 = vld [vmem:[%s1916_s4 + $0x8] sm:$0xff] }
  0x2c   : > { %727 = vmatpush.bf16.msrb.mxu2 %v1425_v3  ;;  %653 = vmatmul.bf16.vlgmr.msra.gmra.mxu3 %v478_v14  ;;  %v414_v46 = vsub.f32 1.5, %v413_v40  ;;  %v420_v3 = vand.u32 2147483648, %v1676_v59  ;;  %v437_v7 = vmul.f32 0.5, %v436_v1 }
  0x2d   : > { %825 = vmatpush.bf16.msrb.mxu3 %v1433_v4  ;;  %643 = vmatmul.bf16.vlgmr.msra.gmra.mxu1 %v476_v27  ;;  %v403_v54 = vmul.f32 %v1480_v24, %v402_v45  ;;  %v426_v10 = vsub.f32 1.5, %v425_v6 }
  0x2e   : > { %v415_v55 = vmul.f32 %v1482_v28, %v414_v46  ;;  %v438_v9 = vsub.f32 1.5, %v437_v7 }
  0x2f   : > { %v404_v62 = vmul.f32 %v403_v54, %v1674_v58  ;;  %v427_v28 = vmul.f32 %v1724_v44, %v426_v10 }
  0x30   : > { %728 = vmatpush.bf16.msrb.mxu2 %v1424_v23  ;;  %v416_v63 = vmul.f32 %v415_v55, %v1676_v59  ;;  %v1790_v23 = vld [vmem:[%s1776_s14 + $0x8] sm:$0xff]  ;;  %v439_v29 = vmul.f32 %v1486_v47, %v438_v9  ;;  %v1476_v9 = vld [vmem:[%s1915_s3] ss:$0 sm:$0xff] }
  0x31   : > { %826 = vmatpush.bf16.msrb.mxu3 %v1432_v8  ;;  %v406_v4 = vsel %vm405_vm0, %v1674_v58, %v404_v62  ;;  %v1488_v8 = vpop.eup %1487  ;;  %v757_v27 = vpack.c.bf16 %v1790_v23, %v1787_v20  ;;  %v428_v31 = vmul.f32 %v427_v28, %v1696_v21  ;;  %v1437_v62 = vld [vmem:[%s1916_s4 + $0x18] sm:$0xff] }
  0x32   : > { %v418_v5 = vsel %vm417_vm1, %v1676_v59, %v416_v63  ;;  %v1426_v59 = vld [vmem:[%s1914_s2 + $0xc0] sm:$0xff]  ;;  %v409_v14 = vsel %vm407_vm2, %v408_v2, %v406_v4  ;;  %v1490_v24 = vpop.eup %1489  ;;  %v447_v58 = vmul.f32 %v1488_v8, %v1739_v60  ;;  %v440_v32 = vmul.f32 %v439_v29, %v1704_v11  ;;  %v1436_v63 = vld [vmem:[%s1916_s4 + $0x10] sm:$0xff] }
  0x33   : > { %v421_v18 = vsel %vm419_vm3, %v420_v3, %v418_v5  ;;  %v459_v30 = vmul.f32 %v1490_v24, %v1741_v61  ;;  %v430_v36 = vsel %vm429_vm4, %v1696_v21, %v428_v31 }
  0x34   : > { %729 = vmatpush.bf16.msrb.mxu2 %v1423_v19  ;;  %v659_v26 = vpack.c.bf16 %v421_v18, %v409_v14  ;;  %v448_v34 = vmul.f32 %v1488_v8, %v447_v58  ;;  %v432_v19 = vand.u32 2147483648, %v1696_v21  ;;  %v442_v37 = vsel %vm441_vm5, %v1704_v11, %v440_v32 }
  0x35   : > { %827 = vmatpush.bf16.msrb.mxu3 %v1431_v22  ;;  %v460_v35 = vmul.f32 %v1490_v24, %v459_v30  ;;  %v444_v22 = vand.u32 2147483648, %v1704_v11 }
  0x36   : > { %v449_v38 = vmul.f32 0.5, %v448_v34  ;;  %v433_v40 = vsel %vm431_vm6, %v432_v19, %v430_v36 }
  0x37   : > { %v461_v39 = vmul.f32 0.5, %v460_v35  ;;  %v445_v41 = vsel %vm443_vm7, %v444_v22, %v442_v37 }
  0x38   : > { %730 = vmatpush.bf16.msrb.mxu2 %v1422_v42  ;;  %v1808_v42 = vld [vmem:[%s1776_s14 + $0x10] sm:$0xff]  ;;  %v450_v44 = vsub.f32 1.5, %v449_v38  ;;  %v660_v46 = vpack.c.bf16 %v445_v41, %v433_v40  ;;  %v1449_v38 = vld [vmem:[%s1918_s6 + $0x38] sm:$0xff] }
  0x39   : > { %828 = vmatpush.bf16.msrb.mxu3 %v1430_v43  ;;  %v1811_v43 = vld [vmem:[%s1776_s14 + $0x18] sm:$0xff]  ;;  %v462_v45 = vsub.f32 1.5, %v461_v39  ;;  %1043 = vmatpush.bf16.msrb.mxu1 %v1449_v38  ;;  %v1448_v41 = vld [vmem:[%s1918_s6 + $0x30] sm:$0xff]  ;;  %v1478_v38 = vld [vmem:[%s1919_s7] ss:$0 sm:$0xff] }
  0x3a   : > { %v758_v47 = vpack.c.bf16 %v1811_v43, %v1808_v42  ;;  %v451_v48 = vmul.f32 %v1488_v8, %v450_v44 }
  0x3b   : > { %576 = vmatmul.bf16.gmra.mxu0 %v496_v16  ;;  %v463_v49 = vmul.f32 %v1490_v24, %v462_v45  ;;  %v1439_v16 = vld [vmem:[%s1916_s4 + $0x28] sm:$0xff] }
  0x3c   : > { %731 = vmatpush.bf16.msrb.mxu2 %v1421_v50  ;;  %v452_v21 = vmul.f32 %v451_v48, %v1739_v60  ;;  %v456_v50 = vand.u32 2147483648, %v1739_v60 }
  0x3d   : > { %829 = vmatpush.bf16.msrb.mxu3 %v1429_v51  ;;  %648 = vmatmul.bf16.gmra.mxu1 %v477_v17  ;;  %v464_v11 = vmul.f32 %v463_v49, %v1741_v61  ;;  %v468_v51 = vand.u32 2147483648, %v1741_v61  ;;  %v1438_v17 = vld [vmem:[%s1916_s4 + $0x20] sm:$0xff]  ;;  %v1447_v49 = vld [vmem:[%s1918_s6 + $0x28] sm:$0xff] }
  0x3e   : > { %v454_v52 = vsel %vm453_vm8, %v1739_v60, %v452_v21  ;;  %v1441_v60 = vld [vmem:[%s1916_s4 + $0x38] sm:$0xff]  ;;  %1044 = vmatpush.bf16.msrb.mxu1 %v1448_v41 }
  0x3f   : > { %v466_v53 = vsel %vm465_vm9, %v1741_v61, %v464_v11  ;;  %v457_v54 = vsel %vm455_vm10, %v456_v50, %v454_v52  ;;  %942 = vmatpush.bf16.msrb.mxu0 %v1441_v60  ;;  %v1440_v61 = vld [vmem:[%s1916_s4 + $0x30] sm:$0xff]  ;;  %v1445_v60 = vld [vmem:[%s1918_s6 + $0x18] sm:$0xff] }
  0x40   : > { %732 = vmatpush.bf16.msrb.mxu2 %v1420_v12  ;;  %v469_v55 = vsel %vm467_vm11, %v468_v51, %v466_v53  ;;  %v1446_v51 = vld [vmem:[%s1918_s6 + $0x20] sm:$0xff] }
  0x41   : > { %830 = vmatpush.bf16.msrb.mxu3 %v1428_v15  ;;  %v661_v12 = vpack.c.bf16 %v469_v55, %v457_v54  ;;  %v759_v15 = vpack.c.bf16 %v1829_v57, %v1826_v56 }
  0x42   : > { %1045 = vmatpush.bf16.msrb.mxu1 %v1447_v49 }
  0x43   : > { %943 = vmatpush.bf16.msrb.mxu0 %v1440_v61 }
  0x44   : > { %733 = vmatpush.bf16.msrb.mxu2 %v1419_v25 }
  0x45   : > { %831 = vmatpush.bf16.msrb.mxu3 %v1427_v33  ;;  %v1434_v33 = vld [vmem:[%s1916_s4] sm:$0xff] }
  0x46   : > { %1046 = vmatpush.bf16.msrb.mxu1 %v1446_v51 }
  0x47   : > { %944 = vmatpush.bf16.msrb.mxu0 %v1439_v16 }
  0x48   : > { %734 = vmatpush.bf16.msrb.mxu2 %v1418_v13 }
  0x49   : > { %832 = vmatpush.bf16.msrb.mxu3 %v1426_v59 }
  0x4a   : > { %1047 = vmatpush.bf16.msrb.mxu1 %v1445_v60 }
  0x4b   : > { %735 = vmatmul.bf16.vlgmr.msrb.gmra.mxu2 %v659_v26  ;;  %945 = vmatpush.bf16.msrb.mxu0 %v1438_v17 }
  0x4c   : > { %833 = vmatmul.bf16.vlgmr.msrb.gmra.mxu3 %v757_v27 }
  0x4f   : > { %946 = vmatpush.bf16.msrb.mxu0 %v1437_v62 }
  0x53   : > { %947 = vmatpush.bf16.msrb.mxu0 %v1436_v63 }
  0x57   : > { %948 = vmatpush.bf16.msrb.mxu0 %v1435_v0 }
  0x5b   : > { %740 = vmatmul.bf16.gmra.mxu2 %v660_v46  ;;  %949 = vmatpush.bf16.msrb.mxu0 %v1434_v33 }
  0x5c   : > { %838 = vmatmul.bf16.gmra.mxu3 %v758_v47 }
  0x6b   : > { %745 = vmatmul.bf16.gmra.mxu2 %v661_v12 }
  0x6c   : > { %843 = vmatmul.bf16.gmra.mxu3 %v759_v15 }
  0xa8   : > { %v572_v2 = vpop.f32.mrf.mxu0 }
  0xaa   : > { %v644_v3 = vpop.f32.mrf.mxu1 }
  0xab   : > { %v645_v6 = vadd.f32 %v644_v3, %v572_v2 }
  0xae   : > { %v582_v1 = vpop.f32.mrf.mxu2 }
  0xaf   : > { %v654_v25 = vpop.f32.mrf.mxu3 }
  0xb0   : > { %v574_v7 = vpop.f32.mrf.mxu0  ;;  %v655_v12 = vadd.f32 %v654_v25, %v582_v1  ;;  %v1444_v25 = vld [vmem:[%s1918_s6 + $0x10] sm:$0xff] }
  0xb1   : > { %1048 = vmatpush.bf16.msrb.mxu1 %v1444_v25 }
  0xb2   : > { %v646_v13 = vpop.f32.mrf.mxu1 }
  0xb3   : > { %v647_v8 = vadd.f32 %v646_v13, %v574_v7 }
  0xb6   : > { %v584_v4 = vpop.f32.mrf.mxu2 }
  0xb7   : > { %v656_v5 = vpop.f32.mrf.mxu3 }
  0xb8   : > { %v577_v28 = vpop.f32.mrf.mxu0  ;;  %v657_v16 = vadd.f32 %v656_v5, %v584_v4  ;;  %v1443_v4 = vld [vmem:[%s1918_s6 + $0x8] sm:$0xff]  ;;  %v1442_v5 = vld [vmem:[%s1918_s6] sm:$0xff] }
  0xb9   : > { %1049 = vmatpush.bf16.msrb.mxu1 %v1443_v4 }
  0xba   : > { %v649_v29 = vpop.f32.mrf.mxu1 }
  0xbb   : > { %v650_v34 = vadd.f32 %v649_v29, %v577_v28 }
  0xbd   : > { %1050 = vmatpush.bf16.msrb.mxu1 %v1442_v5 }
  0xc0   : > { %v579_v39 = vpop.f32.mrf.mxu0 }
  0xc2   : > { %v651_v40 = vpop.f32.mrf.mxu1 }
  0xc3   : > { %v652_v44 = vadd.f32 %v651_v40, %v579_v39 }
  0xce   : > { %v736_v59 = vpop.f32.mrf.mxu2 }
  0xcf   : > { %v834_v14 = vpop.f32.mrf.mxu3  ;;  %v751_v18 = vadd.f32 %v736_v59, %v645_v6  ;;  %v1477_v59 = vld [vmem:[%s1917_s5] ss:$0 sm:$0xff] }
  0xd1   : > { %v849_v10 = vadd.f32 %v834_v14, %v751_v18 }
  0xd3   : > { %v859_v58 = vadd.f32 %v1476_v9, %v849_v10 }
  0xd5   : > { %v865_v32 = vmax.f32 %v859_v58, 0.0 }
  0xd6   : > { %v738_v24 = vpop.f32.mrf.mxu2 }
  0xd7   : > { %v836_v26 = vpop.f32.mrf.mxu3  ;;  %v752_v27 = vadd.f32 %v738_v24, %v647_v8 }
  0xd9   : > { %v850_v30 = vadd.f32 %v836_v26, %v752_v27 }
  0xdb   : > { %v860_v31 = vadd.f32 %v1476_v9, %v850_v30 }
  0xdd   : > { %v866_v35 = vmax.f32 %v860_v31, 0.0 }
  0xde   : > { %v741_v19 = vpop.f32.mrf.mxu2 }
  0xdf   : > { %v839_v22 = vpop.f32.mrf.mxu3  ;;  %v871_v36 = vpack.c.bf16 %v866_v35, %v865_v32  ;;  %v753_v37 = vadd.f32 %v741_v19, %v650_v34 }
  0xe1   : > { %950 = vmatmul.bf16.vlgmr.msrb.gmra.mxu0 %v871_v36  ;;  %v851_v45 = vadd.f32 %v839_v22, %v753_v37 }
  0xe3   : > { %v861_v21 = vadd.f32 %v1476_v9, %v851_v45 }
  0xe5   : > { %v867_v52 = vmax.f32 %v861_v21, 0.0 }
  0xe6   : > { %v743_v46 = vpop.f32.mrf.mxu2 }
  0xe7   : > { %v841_v47 = vpop.f32.mrf.mxu3  ;;  %v754_v48 = vadd.f32 %v743_v46, %v652_v44 }
  0xe9   : > { %v852_v11 = vadd.f32 %v841_v47, %v754_v48 }
  0xeb   : > { %v862_v50 = vadd.f32 %v1476_v9, %v852_v11 }
  0xed   : > { %v868_v53 = vmax.f32 %v862_v50, 0.0 }
  0xee   : > { %v746_v54 = vpop.f32.mrf.mxu2 }
  0xef   : > { %v844_v55 = vpop.f32.mrf.mxu3  ;;  %v872_v15 = vpack.c.bf16 %v868_v53, %v867_v52  ;;  %v755_v61 = vadd.f32 %v746_v54, %v655_v12 }
  0xf1   : > { %955 = vmatmul.bf16.gmra.mxu0 %v872_v15  ;;  %v853_v17 = vadd.f32 %v844_v55, %v755_v61 }
  0xf3   : > { %v863_v33 = vadd.f32 %v1476_v9, %v853_v17 }
  0xf5   : > { %v869_v6 = vmax.f32 %v863_v33, 0.0 }
  0xf6   : > { %v748_v62 = vpop.f32.mrf.mxu2 }
  0xf7   : > { %v756_v63 = vadd.f32 %v748_v62, %v657_v16  ;;  %v846_v0 = vpop.f32.mrf.mxu3 }
  0xf9   : > { %v854_v2 = vadd.f32 %v846_v0, %v756_v63 }
  0xfb   : > { %v864_v3 = vadd.f32 %v1476_v9, %v854_v2 }
  0xfd   : > { %v870_v7 = vmax.f32 %v864_v3, 0.0 }
  0xff   : > { %v873_v1 = vpack.c.bf16 %v870_v7, %v869_v6 }
 0x101   : > { %960 = vmatmul.bf16.gmra.mxu0 %v873_v1 }
 0x15e   : > { %v951_v13 = vpop.f32.mrf.mxu0 }
 0x15f   : > { %v952_v14 = vadd.f32 %v1477_v59, %v951_v13 }
 0x161   : > { %v966_v10 = vmax.f32 %v952_v14, 0.0 }
 0x166   : > { %v953_v18 = vpop.f32.mrf.mxu0 }
 0x167   : > { %v954_v8 = vadd.f32 %v1477_v59, %v953_v18 }
 0x169   : > { %v967_v9 = vmax.f32 %v954_v8, 0.0 }
 0x16b   : > { %v972_v24 = vpack.c.bf16 %v967_v9, %v966_v10 }
 0x16d   : > { %1051 = vmatmul.bf16.vlgmr.msrb.gmra.mxu1 %v972_v24 }
 0x16e   : > { %v956_v26 = vpop.f32.mrf.mxu0 }
 0x16f   : > { %v957_v27 = vadd.f32 %v1477_v59, %v956_v26 }
 0x171   : > { %v968_v58 = vmax.f32 %v957_v27, 0.0 }
 0x176   : > { %v958_v28 = vpop.f32.mrf.mxu0 }
 0x177   : > { %v959_v29 = vadd.f32 %v1477_v59, %v958_v28 }
 0x179   : > { %v969_v30 = vmax.f32 %v959_v29, 0.0 }
 0x17b   : > { %v973_v31 = vpack.c.bf16 %v969_v30, %v968_v58 }
 0x17d   : > { %1056 = vmatmul.bf16.gmra.mxu1 %v973_v31 }
 0x17e   : > { %v961_v32 = vpop.f32.mrf.mxu0 }
 0x17f   : > { %v962_v34 = vadd.f32 %v1477_v59, %v961_v32 }
 0x181   : > { %v970_v22 = vmax.f32 %v962_v34, 0.0 }
 0x186   : > { %v963_v35 = vpop.f32.mrf.mxu0 }
 0x187   : > { %v964_v19 = vadd.f32 %v1477_v59, %v963_v35 }
 0x189   : > { %v971_v36 = vmax.f32 %v964_v19, 0.0 }
 0x18b   : > { %v974_v37 = vpack.c.bf16 %v971_v36, %v970_v22 }
 0x18d   : > { %1061 = vmatmul.bf16.gmra.mxu1 %v974_v37 }
 0x1ea   : > { %v1052_v39 = vpop.f32.mrf.mxu1 }
 0x1eb   : > { %v1053_v40 = vadd.f32 %v1478_v38, %v1052_v39 }
 0x1ed   : > { %1491 = vtanh.f32 %v1053_v40 }
 0x1f2   : > { %v1054_v41 = vpop.f32.mrf.mxu1 }
 0x1f3   : > { %v1492_v44 = vpop.eup %1491  ;;  %v1055_v45 = vadd.f32 %v1478_v38, %v1054_v41 }
 0x1f4   : > { %v1073_v46 = vadd.f32 %v1492_v44, %v1787_v20 }
 0x1f5   : > { %1493 = vtanh.f32 %v1055_v45 }
 0x1f6   : > { %1079 = vst [vmem:[%s1895_s21] sm:$0xff] %v1073_v46 }
 0x1fa   : > { %v1057_v47 = vpop.f32.mrf.mxu1 }
 0x1fb   : > { %v1494_v48 = vpop.eup %1493  ;;  %v1058_v49 = vadd.f32 %v1478_v38, %v1057_v47 }
 0x1fc   : > { %v1074_v21 = vadd.f32 %v1494_v48, %v1790_v23 }
 0x1fd   : > { %1495 = vtanh.f32 %v1058_v49 }
 0x1fe   : > { %1080 = vst [vmem:[%s1895_s21 + $0x8] sm:$0xff] %v1074_v21 }
 0x202   : > { %v1059_v11 = vpop.f32.mrf.mxu1 }
 0x203   : > { %v1496_v50 = vpop.eup %1495  ;;  %v1060_v51 = vadd.f32 %v1478_v38, %v1059_v11 }
 0x204   : > { %v1075_v52 = vadd.f32 %v1496_v50, %v1808_v42 }
 0x205   : > { %1497 = vtanh.f32 %v1060_v51 }
 0x206   : > { %1081 = vst [vmem:[%s1895_s21 + $0x10] sm:$0xff] %v1075_v52 }
 0x20a   : > { %v1062_v20 = vpop.f32.mrf.mxu1 }
 0x20b   : > { %v1498_v53 = vpop.eup %1497  ;;  %v1063_v54 = vadd.f32 %v1478_v38, %v1062_v20 }
 0x20c   : > { %v1076_v55 = vadd.f32 %v1498_v53, %v1811_v43 }
 0x20d   : > { %1499 = vtanh.f32 %v1063_v54 }
 0x20e   : > { %1082 = vst [vmem:[%s1895_s21 + $0x18] sm:$0xff] %v1076_v55 }
 0x212   : > { %v1064_v12 = vpop.f32.mrf.mxu1 }
 0x213   : > { %v1500_v23 = vpop.eup %1499  ;;  %v1065_v15 = vadd.f32 %v1478_v38, %v1064_v12 }
 0x214   : > { %v1077_v60 = vadd.f32 %v1500_v23, %v1826_v56 }
 0x215   : > { %1501 = vtanh.f32 %v1065_v15 }
 0x216   : > { %1083 = vst [vmem:[%s1895_s21 + $0x20] sm:$0xff] %v1077_v60 }
 0x21b   : > { %v1502_v61 = vpop.eup %1501 }
 0x21c   : > { %v1078_v42 = vadd.f32 %v1502_v61, %v1829_v57 }
 0x21e   : > { %1084 = vst [vmem:[%s1895_s21 + $0x28] sm:$0xff] %v1078_v42 }
 0x21f PF: > { %s18_s27 = sadd.s32 1, %s1509_s27  }
 0x220   : > { %p15_p4 = scmp.ge.s32.totalorder %s18_s27, 4  }
 0x222   :  { %17 = sbr.rel (!%p15_p4) target bundleno = 1 (0x1), region = 88 }

</bundles_post_ra>
